<compile_context>
chip_gen: v5e
topology: v5e:2x2
jax: 0.10.0
libtpu: 0.0.40
codegen_flags: <defaults>
</compile_context>

<pallas_src>
import functools

import numpy as np
import jax
import jax.numpy as jnp
from jax.experimental import pallas as pl
from jax.experimental.pallas import tpu as pltpu

LANE = 128
MAX_TILE_M = 1024
MAX_TILE_N = 1024
VMEM_LIMIT = 48 * 1024 * 1024  # <= ~56 MiB keeps v7x (64 MiB physical) safe


def _round_up(x, m):
    return ((x + m - 1) // m) * m


def _next_pow2(x):
    return 1 << (max(int(x), 1) - 1).bit_length()


def _choose_tile_m(M):
    """Largest query tile (multiple of 8, <= MAX_TILE_M) that keeps >= 2 grid
    steps when M allows (v7x: 2 TensorCores share 'parallel' grid axes)."""
    if M <= 16:
        return _round_up(max(M, 8), 8)
    half = _round_up((M + 1) // 2, 8)
    return min(MAX_TILE_M, half)


# ----------------------------------------------------------------------------
# Pallas kernel: fused matching-cost matrix
# ----------------------------------------------------------------------------
def _cost_matrix_kernel(q_ref, t_ref, o_ref, *, n_cls, negate_dist):
    """One (query-tile, target-tile) block of the matching cost matrix.

    q_ref : (TM, n_cls+2)  cols [0:n_cls] raw class logits,
                           cols [n_cls:n_cls+2] predicted xy * |cost_point|
    t_ref : (n_cls+2, TN)  rows [0:n_cls] one-hot(target label) * (-cost_class),
                           rows [n_cls:n_cls+2] target xy * |cost_point|
    o_ref : (TM, TN)       cost_point*||q - t||_2 - cost_class*prob[q, label_t]
    """
    q = q_ref[...]
    t = t_ref[...]

    logits = q[:, :n_cls]
    pts = q[:, n_cls:n_cls + 2]
    oh = t[:n_cls, :]          # already scaled by -cost_class
    txy = t[n_cls:n_cls + 2, :]  # already scaled by |cost_point|

    # softmax over the (tiny) class axis, f32
    m = jnp.max(logits, axis=-1, keepdims=True)
    e = jnp.exp(logits - m)
    probs = e / jnp.sum(e, axis=-1, keepdims=True)

    # class cost: sum_c probs[:, c] * (-cost_class * onehot[c, :])
    # n_cls is tiny -> unrolled broadcast-multiply on the VPU.
    cls_cost = probs[:, 0:1] * oh[0:1, :]
    for c in range(1, n_cls):
        cls_cost = cls_cost + probs[:, c:c + 1] * oh[c:c + 1, :]

    # pairwise L2 distance (dim 2); operands pre-scaled so sqrt gives w_pt*dist
    dx = pts[:, 0:1] - txy[0:1, :]
    d2 = dx * dx
    dy = pts[:, 1:2] - txy[1:2, :]
    d2 = d2 + dy * dy
    dist = jnp.sqrt(d2)
    if negate_dist:              # only if cost_point < 0 (unusual)
        dist = -dist

    o_ref[...] = dist + cls_cost


@functools.partial(jax.jit,
                   static_argnames=("cost_point", "tile_m", "tile_n"))
def _pallas_cost_matrix(logits2d, points2d, t_packed,
                        *, cost_point, tile_m, tile_n):
    """logits2d: (M, n_cls), points2d: (M, 2),
       t_packed: (n_cls+2, Tp) pre-scaled targets (Tp multiple of tile_n)
       -> (M, Tp) cost matrix in f32."""
    M, n_cls = logits2d.shape
    Tp = t_packed.shape[1]
    w_pt = abs(float(cost_point))
    negate_dist = float(cost_point) < 0.0

    # Pack [logits | scaled points] into one narrow input (one DMA per step).
    q_packed = jnp.concatenate(
        [logits2d, points2d.astype(jnp.float32) * w_pt], axis=1)

    Mp = _round_up(M, tile_m)
    if Mp != M:
        q_packed = jnp.pad(q_packed, ((0, Mp - M), (0, 0)))

    out = pl.pallas_call(
        functools.partial(_cost_matrix_kernel, n_cls=n_cls,
                          negate_dist=negate_dist),
        out_shape=jax.ShapeDtypeStruct((Mp, Tp), jnp.float32),
        grid=(Mp // tile_m, Tp // tile_n),
        in_specs=[
            pl.BlockSpec((tile_m, n_cls + 2), lambda i, j: (i, 0)),  # queries
            pl.BlockSpec((n_cls + 2, tile_n), lambda i, j: (0, j)),  # targets
        ],
        out_specs=pl.BlockSpec((tile_m, tile_n), lambda i, j: (i, j)),
        compiler_params=pltpu.CompilerParams(
            dimension_semantics=("parallel", "parallel"),
            vmem_limit_bytes=VMEM_LIMIT,
        ),
    )(q_packed, t_packed)
    return out[:M]


# ----------------------------------------------------------------------------
# Host-side helpers
# ----------------------------------------------------------------------------
def compute_cost_matrix(outputs, targets, cost_class=1.0, cost_point=1.0):
    """Return the (bs, num_queries, total_targets) matching-cost matrix (numpy)."""
    pred_logits = jnp.asarray(outputs['pred_logits'], jnp.float32)
    pred_points = jnp.asarray(outputs['pred_points'], jnp.float32)
    bs, num_queries, n_cls = pred_logits.shape
    M = bs * num_queries

    sizes = [int(np.asarray(v['point']).reshape(-1, 2).shape[0]) for v in targets]
    T = int(sum(sizes))
    if T == 0:
        return np.zeros((bs, num_queries, 0), np.float32)

    tgt_ids = np.concatenate(
        [np.asarray(v['labels']).reshape(-1) for v in targets]).astype(np.int64)
    tgt_pts = np.concatenate(
        [np.asarray(v['point']).reshape(-1, 2) for v in targets], axis=0
    ).astype(np.float32)
    if tgt_ids.size and (tgt_ids.min() < 0 or tgt_ids.max() >= n_cls):
        raise ValueError("target label out of range [0, num_classes]")

    # Bucket padded target count to a power of two (>=128): avoids a Mosaic
    # recompile every time the number of targets changes.
    Tp = max(LANE, _next_pow2(T))
    tile_n = min(Tp, MAX_TILE_N)
    tile_m = _choose_tile_m(M)

    # Packed, pre-scaled resident target block (host numpy, negligible cost):
    #   rows [0:n_cls]        : -cost_class * onehot(label)
    #   rows [n_cls:n_cls+2]  : |cost_point| * (x, y)
    w_pt = abs(float(cost_point))
    t_packed = np.zeros((n_cls + 2, Tp), np.float32)
    t_packed[tgt_ids, np.arange(T)] = -float(cost_class)
    t_packed[n_cls, :T] = w_pt * tgt_pts[:, 0]
    t_packed[n_cls + 1, :T] = w_pt * tgt_pts[:, 1]

    C = _pallas_cost_matrix(
        pred_logits.reshape(M, n_cls),
        pred_points.reshape(M, 2),
        jnp.asarray(t_packed),
        cost_point=float(cost_point), tile_m=tile_m, tile_n=tile_n)
    C = jax.block_until_ready(C)
    return np.asarray(C).reshape(bs, num_queries, Tp)[:, :, :T]


def linear_sum_assignment_np(cost):
    """Minimum-cost bipartite assignment (shortest augmenting path).
    Same return convention as scipy.optimize.linear_sum_assignment.
    scipy's C implementation is preferred when available."""
    try:
        from scipy.optimize import linear_sum_assignment as _scipy_lsa
        r, c = _scipy_lsa(np.asarray(cost, dtype=np.float64))
        return np.asarray(r, np.int64), np.asarray(c, np.int64)
    except ImportError:
        pass

    cost = np.asarray(cost, dtype=np.float64)
    transposed = False
    if cost.shape[0] > cost.shape[1]:
        cost = cost.T
        transposed = True
    n, m = cost.shape  # n <= m
    if n == 0:
        return np.zeros((0,), np.int64), np.zeros((0,), np.int64)

    INF = np.inf
    u = np.zeros(n + 1)
    v = np.zeros(m + 1)
    p = np.zeros(m + 1, dtype=np.int64)
    way = np.zeros(m + 1, dtype=np.int64)
    for i in range(1, n + 1):
        p[0] = i
        j0 = 0
        minv = np.full(m + 1, INF)
        used = np.zeros(m + 1, dtype=bool)
        while True:
            used[j0] = True
            i0 = p[j0]
            delta = INF
            j1 = 0
            for j in range(1, m + 1):
                if not used[j]:
                    cur = cost[i0 - 1, j - 1] - u[i0] - v[j]
                    if cur < minv[j]:
                        minv[j] = cur
                        way[j] = j0
                    if minv[j] < delta:
                        delta = minv[j]
                        j1 = j
            for j in range(m + 1):
                if used[j]:
                    u[p[j]] += delta
                    v[j] -= delta
                else:
                    minv[j] -= delta
            j0 = j1
            if p[j0] == 0:
                break
        while True:
            j1 = way[j0]
            p[j0] = p[j1]
            j0 = j1
            if j0 == 0:
                break

    rows, cols = [], []
    for j in range(1, m + 1):
        if p[j] != 0:
            rows.append(p[j] - 1)
            cols.append(j - 1)
    rows = np.asarray(rows, dtype=np.int64)
    cols = np.asarray(cols, dtype=np.int64)
    if transposed:
        rows, cols = cols, rows
    order = np.argsort(rows, kind="stable")
    return rows[order], cols[order]


class HungarianMatcher:
    """Bipartite matching between predictions and ground truth.
    Cost matrix computed with a fused Pallas TPU kernel; Hungarian assignment
    runs on host (as in the PyTorch reference)."""

    def __init__(self, cost_class=1.0, cost_point=1.0):
        self.cost_class = cost_class
        self.cost_point = cost_point

    def __call__(self, outputs, targets):
        sizes = [int(np.asarray(v['point']).reshape(-1, 2).shape[0]) for v in targets]
        C = compute_cost_matrix(outputs, targets, self.cost_class, self.cost_point)
        indices = []
        start = 0
        for i, size in enumerate(sizes):
            if size > 0:
                r, c = linear_sum_assignment_np(C[i, :, start:start + size])
                indices.append((r.astype(np.int64), c.astype(np.int64)))
            else:
                indices.append((np.zeros((0,), np.int64), np.zeros((0,), np.int64)))
            start += size
        return indices


# ----------------------------------------------------------------------------
# Pure numpy reference (mirrors the PyTorch cost computation, in f64)
# ----------------------------------------------------------------------------
def _reference_cost_matrix(outputs, targets, cost_class, cost_point):
    logits = np.asarray(outputs['pred_logits'], np.float64)
    points = np.asarray(outputs['pred_points'], np.float64)
    bs, Q, n_cls = logits.shape
    logits = logits.reshape(bs * Q, n_cls)
    points = points.reshape(bs * Q, 2)
    e = np.exp(logits - logits.max(-1, keepdims=True))
    prob = e / e.sum(-1, keepdims=True)
    tgt_ids = np.concatenate(
        [np.asarray(v['labels']).reshape(-1) for v in targets]).astype(np.int64)
    tgt_pts = np.concatenate(
        [np.asarray(v['point']).reshape(-1, 2) for v in targets], 0).astype(np.float64)
    cls_cost = -prob[:, tgt_ids]
    dist = np.sqrt(((points[:, None, :] - tgt_pts[None, :, :]) ** 2).sum(-1))
    C = cost_point * dist + cost_class * cls_cost
    return C.reshape(bs, Q, -1)


# ----------------------------------------------------------------------------
# Main
# ----------------------------------------------------------------------------
if __name__ == "__main__":
    bs, num_queries, num_classes = 2, 256, 1
    key = jax.random.PRNGKey(0)
    k_log, k_pts, k_tgt = jax.random.split(key, 3)

    pred_logits = jax.random.normal(k_log, (bs, num_queries, num_classes + 1),
                                    dtype=jnp.float32)
    pred_points = 128.0 * jax.random.uniform(k_pts, (bs, num_queries, 2),
                                             dtype=jnp.float32)
    outputs = {'pred_logits': pred_logits, 'pred_points': pred_points}

    sizes = [5, 3]
    tkeys = jax.random.split(k_tgt, len(sizes))
    targets = []
    for n_i, tk in zip(sizes, tkeys):
        pts = np.asarray(128.0 * jax.random.uniform(tk, (n_i, 2), dtype=jnp.float32))
        targets.append({'labels': np.full((n_i,), 1, dtype=np.int64), 'point': pts})

    matcher = HungarianMatcher(cost_class=1.0, cost_point=1.0)

    # 1) Pallas-fused cost matrix vs. f64 numpy reference
    C = compute_cost_matrix(outputs, targets, matcher.cost_class, matcher.cost_point)
    C_ref = _reference_cost_matrix(outputs, targets,
                                   matcher.cost_class, matcher.cost_point)
    assert C.shape == (bs, num_queries, sum(sizes))
    np.testing.assert_allclose(C, C_ref, rtol=1e-5, atol=1e-3)

    # 2) full matcher output structure
    indices = matcher(outputs, targets)
    assert len(indices) == bs
    for i, (r, c) in enumerate(indices):
        assert r.shape == (sizes[i],) and c.shape == (sizes[i],)
        assert len(np.unique(r)) == sizes[i]
        assert sorted(c.tolist()) == list(range(sizes[i]))
        assert np.all((r >= 0) & (r < num_queries))

    # 3) optional optimality cross-check against scipy (if available)
    try:
        from scipy.optimize import linear_sum_assignment as _scipy_lsa
        start = 0
        for i, size in enumerate(sizes):
            sub = C_ref[i, :, start:start + size]
            r_s, c_s = _scipy_lsa(sub)
            ours = sum(C_ref[i, r, start + c] for r, c in zip(*indices[i]))
            theirs = float(sub[r_s, c_s].sum())
            assert abs(ours - theirs) <= 1e-4 * max(1.0, abs(theirs))
            start += size
    except ImportError:
        pass

    print("KERNEL_OK")
</pallas_src>

<mosaic_0001>
module attributes {stable_mosaic.version = 11 : i64} {
  func.func @_cost_matrix_kernel(%arg0: i32, %arg1: i32, %arg2: memref<256x4xf32, #tpu.memory_space<vmem>>, %arg3: memref<4x128xf32, #tpu.memory_space<vmem>>, %arg4: memref<256x128xf32, #tpu.memory_space<vmem>>) attributes {dimension_semantics = [#tpu.dimension_semantics<parallel>, #tpu.dimension_semantics<parallel>], iteration_bounds = array<i64: 2, 1>, scalar_prefetch = 0 : i64, scratch_operands = 0 : i64, tpu.core_type = #tpu.core_type<tc>, window_params = [{transform_indices = @transform_0, window_bounds = array<i64: 256, 4>}, {transform_indices = @transform_1, window_bounds = array<i64: 4, 128>}, {transform_indices = @transform_2, window_bounds = array<i64: 256, 128>}]} {
    %c0 = arith.constant 0 : index
    %c0_0 = arith.constant 0 : index
    %0 = vector.load %arg2[%c0, %c0_0] : memref<256x4xf32, #tpu.memory_space<vmem>>, vector<256x4xf32>
    %c0_1 = arith.constant 0 : index
    %c0_2 = arith.constant 0 : index
    %1 = vector.load %arg3[%c0_1, %c0_2] : memref<4x128xf32, #tpu.memory_space<vmem>>, vector<4x128xf32>
    %2 = vector.extract_strided_slice %0 {offsets = [0, 0], sizes = [256, 2], strides = [1, 1]} : vector<256x4xf32> to vector<256x2xf32>
    %3 = vector.extract_strided_slice %0 {offsets = [0, 2], sizes = [256, 2], strides = [1, 1]} : vector<256x4xf32> to vector<256x2xf32>
    %4 = vector.extract_strided_slice %1 {offsets = [0, 0], sizes = [2, 128], strides = [1, 1]} : vector<4x128xf32> to vector<2x128xf32>
    %5 = vector.extract_strided_slice %1 {offsets = [2, 0], sizes = [2, 128], strides = [1, 1]} : vector<4x128xf32> to vector<2x128xf32>
    %cst = arith.constant dense<0xFF800000> : vector<256xf32>
    %6 = vector.multi_reduction <maximumf>, %2, %cst [1] : vector<256x2xf32> to vector<256xf32>
    %7 = vector.shape_cast %6 : vector<256xf32> to vector<256x1xf32>
    %8 = vector.broadcast %7 : vector<256x1xf32> to vector<256x2xf32>
    %9 = arith.subf %2, %8 : vector<256x2xf32>
    %10 = math.exp %9 : vector<256x2xf32>
    %cst_3 = arith.constant dense<0.000000e+00> : vector<256xf32>
    %11 = vector.multi_reduction <add>, %10, %cst_3 [1] : vector<256x2xf32> to vector<256xf32>
    %12 = vector.shape_cast %11 : vector<256xf32> to vector<256x1xf32>
    %13 = vector.broadcast %12 : vector<256x1xf32> to vector<256x2xf32>
    %14 = arith.divf %10, %13 : vector<256x2xf32>
    %15 = vector.extract_strided_slice %14 {offsets = [0, 0], sizes = [256, 1], strides = [1, 1]} : vector<256x2xf32> to vector<256x1xf32>
    %16 = vector.extract_strided_slice %4 {offsets = [0, 0], sizes = [1, 128], strides = [1, 1]} : vector<2x128xf32> to vector<1x128xf32>
    %17 = vector.broadcast %15 : vector<256x1xf32> to vector<256x128xf32>
    %18 = vector.broadcast %16 : vector<1x128xf32> to vector<256x128xf32>
    %19 = arith.mulf %17, %18 : vector<256x128xf32>
    %20 = vector.extract_strided_slice %14 {offsets = [0, 1], sizes = [256, 1], strides = [1, 1]} : vector<256x2xf32> to vector<256x1xf32>
    %21 = vector.extract_strided_slice %4 {offsets = [1, 0], sizes = [1, 128], strides = [1, 1]} : vector<2x128xf32> to vector<1x128xf32>
    %22 = vector.broadcast %20 : vector<256x1xf32> to vector<256x128xf32>
    %23 = vector.broadcast %21 : vector<1x128xf32> to vector<256x128xf32>
    %24 = arith.mulf %22, %23 : vector<256x128xf32>
    %25 = arith.addf %19, %24 : vector<256x128xf32>
    %26 = vector.extract_strided_slice %3 {offsets = [0, 0], sizes = [256, 1], strides = [1, 1]} : vector<256x2xf32> to vector<256x1xf32>
    %27 = vector.extract_strided_slice %5 {offsets = [0, 0], sizes = [1, 128], strides = [1, 1]} : vector<2x128xf32> to vector<1x128xf32>
    %28 = vector.broadcast %26 : vector<256x1xf32> to vector<256x128xf32>
    %29 = vector.broadcast %27 : vector<1x128xf32> to vector<256x128xf32>
    %30 = arith.subf %28, %29 : vector<256x128xf32>
    %31 = arith.mulf %30, %30 : vector<256x128xf32>
    %32 = vector.extract_strided_slice %3 {offsets = [0, 1], sizes = [256, 1], strides = [1, 1]} : vector<256x2xf32> to vector<256x1xf32>
    %33 = vector.extract_strided_slice %5 {offsets = [1, 0], sizes = [1, 128], strides = [1, 1]} : vector<2x128xf32> to vector<1x128xf32>
    %34 = vector.broadcast %32 : vector<256x1xf32> to vector<256x128xf32>
    %35 = vector.broadcast %33 : vector<1x128xf32> to vector<256x128xf32>
    %36 = arith.subf %34, %35 : vector<256x128xf32>
    %37 = arith.mulf %36, %36 : vector<256x128xf32>
    %38 = arith.addf %31, %37 : vector<256x128xf32>
    %39 = math.sqrt %38 : vector<256x128xf32>
    %40 = arith.addf %39, %25 : vector<256x128xf32>
    %c0_4 = arith.constant 0 : index
    %c0_5 = arith.constant 0 : index
    %41 = vector.load %arg4[%c0_4, %c0_5] : memref<256x128xf32, #tpu.memory_space<vmem>>, vector<256x128xf32>
    tpu.vector_store %arg4[%c0_4, %c0_5], %40 {strides = array<i32>} : memref<256x128xf32, #tpu.memory_space<vmem>>, vector<256x128xf32>,
    return
  }
  func.func @transform_0(%arg0: i32, %arg1: i32) -> (i32, i32) {
    %c0_i32 = arith.constant 0 : i32
    %c0_i32_0 = arith.constant 0 : i32
    return %arg0, %c0_i32 : i32, i32
  }
  func.func @transform_1(%arg0: i32, %arg1: i32) -> (i32, i32) {
    %c0_i32 = arith.constant 0 : i32
    %c0_i32_0 = arith.constant 0 : i32
    return %c0_i32, %arg1 : i32, i32
  }
  func.func @transform_2(%arg0: i32, %arg1: i32) -> (i32, i32) {
    %c0_i32 = arith.constant 0 : i32
    return %arg0, %arg1 : i32, i32
  }
}

</mosaic_0001>

<bundles_post_ra>
// kernel: _pallas_cost_matrix.1
= control target key start
LH: loop header
LB: loop body
LE: loop exit
PB: predicated region body
PF: predicated region fallthrough
CT: control target
= control target key end

     0   :  { %7 = vsyncpa [#allocation3], 0  ;;  %s5101_s0 = inlined_call_operand.vmem [shape: f32[512,4], index: 0, kind: input, shape index: {}]   ;;  %s5102_s1 = inlined_call_operand.vmem [shape: f32[4,128], index: 1, kind: input, shape index: {}]   ;;  %s5103_s2 = inlined_call_operand.hbm [shape: f32[512,128], index: 2, kind: output, shape index: {}]  }
   0x1   :  { %9 = vsyncpa [#allocation3 + $0x1], 0  ;;  %s2779_s9 = smov 0   ;;  %s2781_s10 = smov 0  }
   0x2   :  { %s2783_s11 = smov 0   ;;  %s2785_s12 = smov 0  }
   0x3   :  { %s2787_s13 = smov 0   ;;  %s2789_s14 = smov 0  }
   0x4 LB: > { %s2366_s15 = sadd.s32 4294967295, %s2756_s14   ;;  %s2367_s16 = sadd.s32 4294967294, %s2756_s14   ;;  %s2756_s14 = sphi %s2789_s14, %s15_s14   ;;  %s2752_s13 = sphi %s2787_s13, %s5263_s13   ;;  %s2748_s12 = sphi %s2785_s12, %s5262_s12   ;;  %s2744_s11 = sphi %s2783_s11, %s5261_s11   ;;  %s2740_s10 = sphi %s2781_s10, %s5260_s10   ;;  %s2736_s9 = sphi %s2779_s9, %s5259_s9  }
   0x5   : > { %s27_s17 = sadd.s32 1, %s2752_s13  ;;  %s88_s18 = sadd.s32 1, %s2744_s11 }
   0x6   : > { %p29_p0 = scmp.ge.s32.totalorder %s27_s17, 2  ;;  %p98_p1 = scmp.ne.s32.totalorder %s2744_s11, %s2740_s10 }
   0x7   : > { %p99_p2 = scmp.eq.s32.totalorder %s2366_s15, 1  ;;  %p104_p3 = scmp.ne.s32.totalorder %s2740_s10, %s2736_s9 }
   0x8   : > { %s5265_s17 = smov (%p29_p0, %s27_s17), 0  ;;  %p105_p5 = scmp.eq.s32.totalorder %s2367_s16, 1 }
   0x9   : > { %p2819_p4 = por %p99_p2, %p98_p1  ;;  %s83_s20 = ssub.s32 %s2752_s13, %s5265_s17 }
   0xa   : > { %p2371_p6 = scmp.ge.s32.totalorder %s2756_s14, 1  ;;  %p86_p7 = scmp.eq.s32.totalorder %s83_s20, 0 }
   0xb   : > { %p2826_p8 = por %p105_p5, %p104_p3  ;;  %p139_p9 = scmp.lt.s32.totalorder %s2756_s14, 3 }
   0xc   : > { %s2832_s22 = scalar_select %p86_p7, %s2744_s11, %s88_s18  }
   0xd   : > { %p140_p10 = pnand %p2371_p6, %p139_p9 }
   0xf   : > { %143 = sbr.rel (%p140_p10) target bundleno = 828 (0x33c), region = 28 }
  0x14   : > { %s2373_s23 = sshll.u32 %s2748_s12, 5  ;;  %vm209_vm0 = vcmask 15360   ;;  %s162_s30 = sand.u32 1, %s2740_s10  }
  0x15   : > { %p166_p11 = scmp.lt.s32.totalorder %s2373_s23, 63  ;;  %s2372_s3 = sshll.u32 %s162_s30, 8 }
  0x16   : > { %s4578_s4 = scalar_lea.vmem [#allocation2], %s2372_s3  ;;  %s2380_s5 = sshll.u32 %s2748_s12, 8 }
  0x17   : > { %s5267_s23 = smov (!%p166_p11, %s2373_s23), 63  ;;  %s2275_s8 = scalar_lea.hbm %s5103_s2, %s2380_s5 }
  0x18   : > { %s2374_s24 = sshll.u32 %s5267_s23, 3  ;;  %s2276_s12 = sshll.u32 %s4578_s4, 4  ;;  %s2277_s12 = int_to_ptr.vmem [resolvable:$true] %s2276_s12 }
  0x19   : > { %s2838_s27 = scalar_lea.vmem %s5101_s0, %s2374_s24  ;;  %s2278_s15 = sshll.u32 %s2275_s8, 4  ;;  %s2279_s15 = int_to_ptr.hbm [resolvable:$true] %s2278_s15 }
  0x1a   : > { %v2841_v0 = vld [vmem:[%s2838_s27 + $0x20] sm:$0xff]  ;;  %v2844_v1 = vld [vmem:[%s2838_s27 + $0x10] sm:$0xff]  ;;  %v2856_v6 = vld [vmem:[%s2838_s27 + $0x28] sm:$0xff]  ;;  %s2263_s16 = scalar_lea.sflag [#allocation3], %s162_s30  ;;  %s2692_s18 = sshra.s32 %s2279_s15, 4  ;;  %s2693_s18 = int_to_ptr.hbm [resolvable:$true] %s2692_s18 }
  0x1b   : > { %v2847_v2 = vld [vmem:[%s2838_s27] sm:$0xff]  ;;  %v222_v3 = vsel %vm209_vm0, %v2841_v0, -inf  ;;  %v216_v4 = vsel %vm209_vm0, %v2844_v1, -inf  ;;  %v2859_v7 = vld [vmem:[%s2838_s27 + $0x18] sm:$0xff]  ;;  %v2862_v8 = vld [vmem:[%s2838_s27 + $0x8] sm:$0xff]  ;;  %v225_v9 = vsel %vm209_vm0, %v2856_v6, -inf  ;;  %p2699_p1 = scmp.lt.s32.totalorder %s2693_s18, %s5103_s2 }
  0x1c   : > { %v210_v5 = vsel %vm209_vm0, %v2847_v2, -inf  ;;  %223 = vmax.xlane.f32.xlu2 %v222_v3  ;;  %217 = vmax.xlane.f32.xlu1 %v216_v4  ;;  %v219_v10 = vsel %vm209_vm0, %v2859_v7, -inf  ;;  %v213_v11 = vsel %vm209_vm0, %v2862_v8, -inf  ;;  %v2871_v12 = vld [vmem:[%s2838_s27 + $0x40] sm:$0xff]  ;;  %v2874_v13 = vld [vmem:[%s2838_s27 + $0x38] sm:$0xff]  ;;  %v2877_v14 = vld [vmem:[%s2838_s27 + $0x30] sm:$0xff] }
  0x1d   : > { %211 = vmax.xlane.f32.xlu0 %v210_v5  ;;  %v234_v15 = vsel %vm209_vm0, %v2871_v12, -inf  ;;  %v231_v16 = vsel %vm209_vm0, %v2874_v13, -inf  ;;  %v228_v17 = vsel %vm209_vm0, %v2877_v14, -inf  ;;  %v2886_v18 = vld [vmem:[%s2838_s27 + $0x58] sm:$0xff]  ;;  %v2889_v19 = vld [vmem:[%s2838_s27 + $0x50] sm:$0xff]  ;;  %v2892_v20 = vld [vmem:[%s2838_s27 + $0x48] sm:$0xff] }
  0x1e   : > { %v243_v21 = vsel %vm209_vm0, %v2886_v18, -inf  ;;  %v240_v22 = vsel %vm209_vm0, %v2889_v19, -inf  ;;  %v237_v23 = vsel %vm209_vm0, %v2892_v20, -inf  ;;  %v2901_v24 = vld [vmem:[%s2838_s27 + $0x70] sm:$0xff]  ;;  %v2904_v25 = vld [vmem:[%s2838_s27 + $0x68] sm:$0xff]  ;;  %v2907_v26 = vld [vmem:[%s2838_s27 + $0x60] sm:$0xff] }
  0x1f   : > { %v252_v27 = vsel %vm209_vm0, %v2901_v24, -inf  ;;  %v249_v28 = vsel %vm209_vm0, %v2904_v25, -inf  ;;  %v246_v29 = vsel %vm209_vm0, %v2907_v26, -inf  ;;  %v2916_v30 = vld [vmem:[%s2838_s27 + $0x88] sm:$0xff]  ;;  %v2919_v31 = vld [vmem:[%s2838_s27 + $0x80] sm:$0xff]  ;;  %v2922_v32 = vld [vmem:[%s2838_s27 + $0x78] sm:$0xff] }
  0x20   : > { %v261_v33 = vsel %vm209_vm0, %v2916_v30, -inf  ;;  %v258_v34 = vsel %vm209_vm0, %v2919_v31, -inf  ;;  %v255_v35 = vsel %vm209_vm0, %v2922_v32, -inf  ;;  %v2931_v36 = vld [vmem:[%s2838_s27 + $0xa0] sm:$0xff]  ;;  %v2934_v37 = vld [vmem:[%s2838_s27 + $0x98] sm:$0xff]  ;;  %v2937_v38 = vld [vmem:[%s2838_s27 + $0x90] sm:$0xff] }
  0x21   : > { %v270_v39 = vsel %vm209_vm0, %v2931_v36, -inf  ;;  %v267_v40 = vsel %vm209_vm0, %v2934_v37, -inf  ;;  %v264_v41 = vsel %vm209_vm0, %v2937_v38, -inf  ;;  %v2946_v42 = vld [vmem:[%s2838_s27 + $0xb8] sm:$0xff]  ;;  %v2949_v43 = vld [vmem:[%s2838_s27 + $0xb0] sm:$0xff]  ;;  %v2952_v44 = vld [vmem:[%s2838_s27 + $0xa8] sm:$0xff] }
  0x22   : > { %v279_v45 = vsel %vm209_vm0, %v2946_v42, -inf  ;;  %v276_v46 = vsel %vm209_vm0, %v2949_v43, -inf  ;;  %v273_v47 = vsel %vm209_vm0, %v2952_v44, -inf  ;;  %v2961_v48 = vld [vmem:[%s2838_s27 + $0xd0] sm:$0xff]  ;;  %v2964_v49 = vld [vmem:[%s2838_s27 + $0xc8] sm:$0xff]  ;;  %v2967_v50 = vld [vmem:[%s2838_s27 + $0xc0] sm:$0xff] }
  0x23   : > { %v288_v51 = vsel %vm209_vm0, %v2961_v48, -inf  ;;  %v285_v52 = vsel %vm209_vm0, %v2964_v49, -inf  ;;  %v282_v53 = vsel %vm209_vm0, %v2967_v50, -inf  ;;  %v2976_v54 = vld [vmem:[%s2838_s27 + $0xe8] sm:$0xff]  ;;  %v2979_v55 = vld [vmem:[%s2838_s27 + $0xe0] sm:$0xff]  ;;  %v2982_v56 = vld [vmem:[%s2838_s27 + $0xd8] sm:$0xff] }
  0x24   : > { %226 = vmax.xlane.f32.xlu2 %v225_v9  ;;  %220 = vmax.xlane.f32.xlu1 %v219_v10  ;;  %v297_v57 = vsel %vm209_vm0, %v2976_v54, -inf  ;;  %v294_v58 = vsel %vm209_vm0, %v2979_v55, -inf  ;;  %v291_v59 = vsel %vm209_vm0, %v2982_v56, -inf  ;;  %v2991_v60 = vld [vmem:[%s2838_s27 + $0xf8] sm:$0xff]  ;;  %v2994_v61 = vld [vmem:[%s2838_s27 + $0xf0] sm:$0xff]  ;;  %s2694_s20 = scalar_lea.hbm %s2693_s18, 256 }
  0x25   : > { %214 = vmax.xlane.f32.xlu0 %v213_v11  ;;  %v303_v62 = vsel %vm209_vm0, %v2991_v60, -inf  ;;  %v300_v63 = vsel %vm209_vm0, %v2994_v61, -inf  ;;  %p2695_p12 = scmp.ne.s32.totalorder %s2693_s18, %s2694_s20  ;;  %s2698_s25 = scalar_lea.hbm %s5103_s2, 512 }
  0x26   : > { %p2700_p2 = scmp.lt.s32.totalorder %s2698_s25, %s2694_s20 }
  0x27   : > { %p2696_p13 = pnand %p2695_p12, %p2819_p4 }
  0x28   : > { %p2701_p3 = por %p2700_p2, %p2699_p1 }
  0x29   : > { %p2697_p0 = pneg %p2696_p13 }
  0x2b   : > { %p2702_p5 = pnand %p2701_p3, %p2697_p0 }
  0x2c   : > { %235 = vmax.xlane.f32.xlu2 %v234_v15  ;;  %232 = vmax.xlane.f32.xlu1 %v231_v16 }
  0x2d   : > { %229 = vmax.xlane.f32.xlu0 %v228_v17 }
  0x34   : > { %244 = vmax.xlane.f32.xlu2 %v243_v21  ;;  %241 = vmax.xlane.f32.xlu1 %v240_v22 }
  0x35   : > { %238 = vmax.xlane.f32.xlu0 %v237_v23 }
  0x3c   : > { %253 = vmax.xlane.f32.xlu2 %v252_v27  ;;  %250 = vmax.xlane.f32.xlu1 %v249_v28 }
  0x3d   : > { %247 = vmax.xlane.f32.xlu0 %v246_v29 }
  0x44   : > { %262 = vmax.xlane.f32.xlu2 %v261_v33  ;;  %259 = vmax.xlane.f32.xlu1 %v258_v34 }
  0x45   : > { %256 = vmax.xlane.f32.xlu0 %v255_v35 }
  0x4c   : > { %271 = vmax.xlane.f32.xlu2 %v270_v39  ;;  %268 = vmax.xlane.f32.xlu1 %v267_v40 }
  0x4d   : > { %265 = vmax.xlane.f32.xlu0 %v264_v41 }
  0x54   : > { %280 = vmax.xlane.f32.xlu2 %v279_v45  ;;  %277 = vmax.xlane.f32.xlu1 %v276_v46 }
  0x55   : > { %274 = vmax.xlane.f32.xlu0 %v273_v47 }
  0x5c   : > { %289 = vmax.xlane.f32.xlu2 %v288_v51  ;;  %286 = vmax.xlane.f32.xlu1 %v285_v52 }
  0x5d   : > { %283 = vmax.xlane.f32.xlu0 %v282_v53 }
  0x64   : > { %298 = vmax.xlane.f32.xlu2 %v297_v57  ;;  %295 = vmax.xlane.f32.xlu1 %v294_v58 }
  0x65   : > { %292 = vmax.xlane.f32.xlu0 %v291_v59 }
  0x6c   : > { %304 = vmax.xlane.f32.xlu1 %v303_v62 }
  0x6d   : > { %301 = vmax.xlane.f32.xlu0 %v300_v63 }
  0x8f   : > { %v224_v3 = vpop.xlane.xlu2 %223  ;;  %v218_v4 = vpop.xlane.xlu1 %217 }
  0x90   : > { %v308_v5 = vsub.f32 %v2844_v1, %v218_v4  ;;  %v212_v9 = vpop.xlane.xlu0 %211  ;;  %v310_v28 = vsub.f32 %v2841_v0, %v224_v3 }
  0x91   : > { %v306_v10 = vsub.f32 %v2847_v2, %v212_v9 }
  0x92   : > { %v342_v11 = vmul.f32 1.442695, %v308_v5 }
  0x93   : > { %v338_v15 = vmul.f32 1.442695, %v306_v10 }
  0x94   : > { %2454 = vpow2.f32 %v342_v11 }
  0x95   : > { %2456 = vpow2.f32 %v338_v15 }
  0x97   : > { %v227_v16 = vpop.xlane.xlu2 %226  ;;  %v221_v17 = vpop.xlane.xlu1 %220 }
  0x98   : > { %v311_v21 = vsub.f32 %v2856_v6, %v227_v16  ;;  %v309_v22 = vsub.f32 %v2859_v7, %v221_v17  ;;  %v215_v23 = vpop.xlane.xlu0 %214  ;;  %v346_v7 = vmul.f32 1.442695, %v310_v28 }
  0x99   : > { %v307_v27 = vsub.f32 %v2862_v8, %v215_v23 }
  0x9a   : > { %v348_v29 = vmul.f32 1.442695, %v311_v21  ;;  %v344_v1 = vmul.f32 1.442695, %v309_v22  ;;  %v3006_v33 = vpop.eup %2454 }
  0x9b   : > { %v340_v2 = vmul.f32 1.442695, %v307_v27  ;;  %v3008_v34 = vpop.eup %2456  ;;  %v408_v35 = vsel %vm209_vm0, %v3006_v33, 0.0 }
  0x9c   : > { %2458 = vpow2.f32 %v348_v29  ;;  %409 = vadd.xlane.f32.xlu1 %v408_v35  ;;  %v402_v6 = vsel %vm209_vm0, %v3008_v34, 0.0 }
  0x9d   : > { %2460 = vpow2.f32 %v344_v1  ;;  %403 = vadd.xlane.f32.xlu2 %v402_v6 }
  0x9e   : > { %2462 = vpow2.f32 %v340_v2 }
  0x9f   : > { %v236_v0 = vpop.xlane.xlu2 %235  ;;  %v233_v8 = vpop.xlane.xlu1 %232  ;;  %2464 = vpow2.f32 %v346_v7 }
  0xa0   : > { %v314_v39 = vsub.f32 %v2871_v12, %v236_v0  ;;  %v230_v40 = vpop.xlane.xlu0 %229  ;;  %v313_v47 = vsub.f32 %v2874_v13, %v233_v8 }
  0xa1   : > { %v312_v41 = vsub.f32 %v2877_v14, %v230_v40 }
  0xa2   : > { %v3016_v45 = vpop.eup %2458  ;;  %v354_v46 = vmul.f32 1.442695, %v314_v39  ;;  %v352_v13 = vmul.f32 1.442695, %v313_v47 }
  0xa3   : > { %v3019_v51 = vpop.eup %2460  ;;  %v350_v52 = vmul.f32 1.442695, %v312_v41  ;;  %v417_v53 = vsel %vm209_vm0, %v3016_v45, 0.0 }
  0xa4   : > { %v3023_v57 = vpop.eup %2462  ;;  %2466 = vpow2.f32 %v354_v46  ;;  %v411_v12 = vsel %vm209_vm0, %v3019_v51, 0.0  ;;  %418 = vadd.xlane.f32.xlu1 %v417_v53 }
  0xa5   : > { %2468 = vpow2.f32 %v350_v52  ;;  %v405_v14 = vsel %vm209_vm0, %v3023_v57, 0.0  ;;  %412 = vadd.xlane.f32.xlu2 %v411_v12  ;;  %v3029_v62 = vpop.eup %2464 }
  0xa6   : > { %406 = vadd.xlane.f32.xlu0 %v405_v14  ;;  %2470 = vpow2.f32 %v352_v13  ;;  %v414_v17 = vsel %vm209_vm0, %v3029_v62, 0.0 }
  0xa7   : > { %v245_v58 = vpop.xlane.xlu2 %244  ;;  %v242_v59 = vpop.xlane.xlu1 %241 }
  0xa8   : > { %v317_v63 = vsub.f32 %v2886_v18, %v245_v58  ;;  %v239_v3 = vpop.xlane.xlu0 %238  ;;  %v316_v10 = vsub.f32 %v2889_v19, %v242_v59 }
  0xa9   : > { %v315_v4 = vsub.f32 %v2892_v20, %v239_v3 }
  0xaa   : > { %v3033_v5 = vpop.eup %2466  ;;  %v360_v9 = vmul.f32 1.442695, %v317_v63  ;;  %v358_v20 = vmul.f32 1.442695, %v316_v10 }
  0xab   : > { %v3036_v11 = vpop.eup %2468  ;;  %v356_v15 = vmul.f32 1.442695, %v315_v4  ;;  %v426_v16 = vsel %vm209_vm0, %v3033_v5, 0.0 }
  0xac   : > { %2472 = vpow2.f32 %v360_v9  ;;  %v420_v18 = vsel %vm209_vm0, %v3036_v11, 0.0  ;;  %427 = vadd.xlane.f32.xlu1 %v426_v16  ;;  %v3044_v22 = vpop.eup %2470 }
  0xad   : > { %2474 = vpow2.f32 %v356_v15  ;;  %421 = vadd.xlane.f32.xlu2 %v420_v18  ;;  %v423_v0 = vsel %vm209_vm0, %v3044_v22, 0.0 }
  0xae   : > { %415 = vadd.xlane.f32.xlu0 %v414_v17  ;;  %2476 = vpow2.f32 %v358_v20 }
  0xaf   : > { %v254_v21 = vpop.xlane.xlu2 %253  ;;  %v251_v19 = vpop.xlane.xlu1 %250 }
  0xb0   : > { %v320_v23 = vsub.f32 %v2901_v24, %v254_v21  ;;  %v248_v27 = vpop.xlane.xlu0 %247  ;;  %v319_v2 = vsub.f32 %v2904_v25, %v251_v19 }
  0xb1   : > { %v318_v28 = vsub.f32 %v2907_v26, %v248_v27 }
  0xb2   : > { %v3048_v29 = vpop.eup %2472  ;;  %v366_v1 = vmul.f32 1.442695, %v320_v23  ;;  %v364_v26 = vmul.f32 1.442695, %v319_v2 }
  0xb3   : > { %v3051_v35 = vpop.eup %2474  ;;  %v362_v6 = vmul.f32 1.442695, %v318_v28  ;;  %v435_v7 = vsel %vm209_vm0, %v3048_v29, 0.0 }
  0xb4   : > { %2478 = vpow2.f32 %v366_v1  ;;  %v429_v24 = vsel %vm209_vm0, %v3051_v35, 0.0  ;;  %436 = vadd.xlane.f32.xlu1 %v435_v7  ;;  %v3059_v39 = vpop.eup %2476 }
  0xb5   : > { %2480 = vpow2.f32 %v362_v6  ;;  %430 = vadd.xlane.f32.xlu2 %v429_v24  ;;  %v432_v58 = vsel %vm209_vm0, %v3059_v39, 0.0 }
  0xb6   : > { %424 = vadd.xlane.f32.xlu0 %v423_v0  ;;  %2482 = vpow2.f32 %v364_v26 }
  0xb7   : > { %v263_v8 = vpop.xlane.xlu2 %262  ;;  %v260_v25 = vpop.xlane.xlu1 %259 }
  0xb8   : > { %v323_v40 = vsub.f32 %v2916_v30, %v263_v8  ;;  %v257_v41 = vpop.xlane.xlu0 %256  ;;  %v322_v53 = vsub.f32 %v2919_v31, %v260_v25 }
  0xb9   : > { %v321_v46 = vsub.f32 %v2922_v32, %v257_v41 }
  0xba   : > { %v3063_v47 = vpop.eup %2478  ;;  %v372_v52 = vmul.f32 1.442695, %v323_v40  ;;  %v370_v32 = vmul.f32 1.442695, %v322_v53 }
  0xbb   : > { %v3066_v12 = vpop.eup %2480  ;;  %v368_v14 = vmul.f32 1.442695, %v321_v46  ;;  %v444_v13 = vsel %vm209_vm0, %v3063_v47, 0.0 }
  0xbc   : > { %2484 = vpow2.f32 %v372_v52  ;;  %v438_v30 = vsel %vm209_vm0, %v3066_v12, 0.0  ;;  %445 = vadd.xlane.f32.xlu1 %v444_v13  ;;  %v3074_v63 = vpop.eup %2482 }
  0xbd   : > { %2486 = vpow2.f32 %v368_v14  ;;  %439 = vadd.xlane.f32.xlu2 %v438_v30  ;;  %v441_v21 = vsel %vm209_vm0, %v3074_v63, 0.0 }
  0xbe   : > { %433 = vadd.xlane.f32.xlu0 %v432_v58  ;;  %2488 = vpow2.f32 %v370_v32 }
  0xbf   : > { %v272_v59 = vpop.xlane.xlu2 %271  ;;  %v269_v31 = vpop.xlane.xlu1 %268 }
  0xc0   : > { %v326_v3 = vsub.f32 %v2931_v36, %v272_v59  ;;  %v266_v4 = vpop.xlane.xlu0 %265  ;;  %v325_v16 = vsub.f32 %v2934_v37, %v269_v31 }
  0xc1   : > { %v324_v9 = vsub.f32 %v2937_v38, %v266_v4 }
  0xc2   : > { %v3078_v10 = vpop.eup %2484  ;;  %v378_v15 = vmul.f32 1.442695, %v326_v3  ;;  %v376_v38 = vmul.f32 1.442695, %v325_v16 }
  0xc3   : > { %v3081_v17 = vpop.eup %2486  ;;  %v374_v18 = vmul.f32 1.442695, %v324_v9  ;;  %v453_v20 = vsel %vm209_vm0, %v3078_v10, 0.0 }
  0xc4   : > { %2490 = vpow2.f32 %v378_v15  ;;  %v447_v36 = vsel %vm209_vm0, %v3081_v17, 0.0  ;;  %454 = vadd.xlane.f32.xlu1 %v453_v20  ;;  %v3089_v23 = vpop.eup %2488 }
  0xc5   : > { %2492 = vpow2.f32 %v374_v18  ;;  %448 = vadd.xlane.f32.xlu2 %v447_v36  ;;  %v450_v8 = vsel %vm209_vm0, %v3089_v23, 0.0 }
  0xc6   : > { %442 = vadd.xlane.f32.xlu0 %v441_v21  ;;  %2494 = vpow2.f32 %v376_v38 }
  0xc7   : > { %v281_v19 = vpop.xlane.xlu2 %280  ;;  %v278_v37 = vpop.xlane.xlu1 %277 }
  0xc8   : > { %v329_v27 = vsub.f32 %v2946_v42, %v281_v19  ;;  %v275_v28 = vpop.xlane.xlu0 %274  ;;  %v328_v7 = vsub.f32 %v2949_v43, %v278_v37 }
  0xc9   : > { %v327_v1 = vsub.f32 %v2952_v44, %v275_v28 }
  0xca   : > { %v3093_v2 = vpop.eup %2490  ;;  %v384_v6 = vmul.f32 1.442695, %v329_v27  ;;  %v382_v44 = vmul.f32 1.442695, %v328_v7 }
  0xcb   : > { %v3096_v0 = vpop.eup %2492  ;;  %v380_v24 = vmul.f32 1.442695, %v327_v1  ;;  %v462_v26 = vsel %vm209_vm0, %v3093_v2, 0.0 }
  0xcc   : > { %2496 = vpow2.f32 %v384_v6  ;;  %v456_v42 = vsel %vm209_vm0, %v3096_v0, 0.0  ;;  %463 = vadd.xlane.f32.xlu1 %v462_v26  ;;  %v3104_v40 = vpop.eup %2494 }
  0xcd   : > { %2498 = vpow2.f32 %v380_v24  ;;  %457 = vadd.xlane.f32.xlu2 %v456_v42  ;;  %v459_v59 = vsel %vm209_vm0, %v3104_v40, 0.0 }
  0xce   : > { %451 = vadd.xlane.f32.xlu0 %v450_v8  ;;  %2500 = vpow2.f32 %v382_v44 }
  0xcf   : > { %v290_v25 = vpop.xlane.xlu2 %289  ;;  %v287_v43 = vpop.xlane.xlu1 %286 }
  0xd0   : > { %v332_v41 = vsub.f32 %v2961_v48, %v290_v25  ;;  %v284_v46 = vpop.xlane.xlu0 %283  ;;  %v331_v13 = vsub.f32 %v2964_v49, %v287_v43 }
  0xd1   : > { %v330_v52 = vsub.f32 %v2967_v50, %v284_v46 }
  0xd2   : > { %v3108_v53 = vpop.eup %2496  ;;  %v390_v14 = vmul.f32 1.442695, %v332_v41  ;;  %v388_v50 = vmul.f32 1.442695, %v331_v13 }
  0xd3   : > { %v3111_v58 = vpop.eup %2498  ;;  %v386_v30 = vmul.f32 1.442695, %v330_v52  ;;  %v471_v32 = vsel %vm209_vm0, %v3108_v53, 0.0  ;;  %v2758_v52 = vmov 0  }
  0xd4   : > { %2502 = vpow2.f32 %v390_v14  ;;  %v465_v48 = vsel %vm209_vm0, %v3111_v58, 0.0  ;;  %472 = vadd.xlane.f32.xlu1 %v471_v32  ;;  %v3119_v3 = vpop.eup %2500  ;;  %2444 = vset.pattern.permute.xlu0 %v2758_v52 }
  0xd5   : > { %2504 = vpow2.f32 %v386_v30  ;;  %466 = vadd.xlane.f32.xlu2 %v465_v48  ;;  %v468_v19 = vsel %vm209_vm0, %v3119_v3, 0.0  ;;  %2442 = vset.pattern.permute.xlu1 %v2758_v52 }
  0xd6   : > { %460 = vadd.xlane.f32.xlu0 %v459_v59  ;;  %2506 = vpow2.f32 %v388_v50  ;;  %2443 = vset.pattern.permute.xlu2 %v2758_v52 }
  0xd7   : > { %v299_v31 = vpop.xlane.xlu2 %298  ;;  %v296_v49 = vpop.xlane.xlu1 %295 }
  0xd8   : > { %v335_v4 = vsub.f32 %v2976_v54, %v299_v31  ;;  %v293_v9 = vpop.xlane.xlu0 %292  ;;  %v334_v20 = vsub.f32 %v2979_v55, %v296_v49 }
  0xd9   : > { %v333_v15 = vsub.f32 %v2982_v56, %v293_v9 }
  0xda   : > { %v3123_v16 = vpop.eup %2502  ;;  %v396_v18 = vmul.f32 1.442695, %v335_v4  ;;  %v394_v56 = vmul.f32 1.442695, %v334_v20 }
  0xdb   : > { %5127 = vst [vmem:[#allocation5_spill] sm:$0xff] %v3123_v16  ;;  %v3126_v21 = vpop.eup %2504  ;;  %v392_v36 = vmul.f32 1.442695, %v333_v15  ;;  %v480_v38 = vsel %vm209_vm0, %v3123_v16, 0.0 }
  0xdc   : > { %2508 = vpow2.f32 %v396_v18  ;;  %v474_v54 = vsel %vm209_vm0, %v3126_v21, 0.0  ;;  %481 = vadd.xlane.f32.xlu1 %v480_v38  ;;  %v3134_v55 = vpop.eup %2506 }
  0xdd   : > { %2510 = vpow2.f32 %v392_v36  ;;  %475 = vadd.xlane.f32.xlu2 %v474_v54  ;;  %5128 = vst [vmem:[#allocation6_spill] sm:$0xff] %v3134_v55  ;;  %v477_v8 = vsel %vm209_vm0, %v3134_v55, 0.0 }
  0xde   : > { %469 = vadd.xlane.f32.xlu0 %v468_v19  ;;  %2512 = vpow2.f32 %v394_v56 }
  0xdf   : > { %v305_v37 = vpop.xlane.xlu1 %304 }
  0xe0   : > { %v302_v27 = vpop.xlane.xlu0 %301  ;;  %v337_v6 = vsub.f32 %v2991_v60, %v305_v37 }
  0xe1   : > { %v336_v28 = vsub.f32 %v2994_v61, %v302_v27 }
  0xe2   : > { %v3137_v1 = vpop.eup %2508  ;;  %v400_v61 = vmul.f32 1.442695, %v337_v6 }
  0xe3   : > { %5129 = vst [vmem:[#allocation7_spill] sm:$0xff] %v3137_v1  ;;  %v3140_v7 = vpop.eup %2510  ;;  %v398_v24 = vmul.f32 1.442695, %v336_v28  ;;  %v489_v26 = vsel %vm209_vm0, %v3137_v1, 0.0 }
  0xe4   : > { %v483_v42 = vsel %vm209_vm0, %v3140_v7, 0.0  ;;  %490 = vadd.xlane.f32.xlu1 %v489_v26  ;;  %v3148_v44 = vpop.eup %2512 }
  0xe5   : > { %2514 = vpow2.f32 %v398_v24  ;;  %484 = vadd.xlane.f32.xlu2 %v483_v42  ;;  %5130 = vst [vmem:[#allocation8_spill] sm:$0xff] %v3148_v44  ;;  %v486_v25 = vsel %vm209_vm0, %v3148_v44, 0.0 }
  0xe6   : > { %478 = vadd.xlane.f32.xlu0 %v477_v8  ;;  %2516 = vpow2.f32 %v400_v61 }
  0xeb   : > { %v3150_v60 = vpop.eup %2514 }
  0xec   : > { %v492_v43 = vsel %vm209_vm0, %v3150_v60, 0.0  ;;  %v3156_v41 = vpop.eup %2516 }
  0xed   : > { %493 = vadd.xlane.f32.xlu2 %v492_v43  ;;  %5131 = vst [vmem:[#allocation9_spill] sm:$0xff] %v3156_v41  ;;  %v495_v46 = vsel %vm209_vm0, %v3156_v41, 0.0 }
  0xee   : > { %487 = vadd.xlane.f32.xlu0 %v486_v25 }
  0xf6   : > { %496 = vadd.xlane.f32.xlu0 %v495_v46 }
 0x10f   : > { %v410_v14 = vpop.xlane.xlu1 %409 }
 0x110   : > { %2518 = vrcp.f32 %v410_v14  ;;  %v404_v13 = vpop.xlane.xlu2 %403  ;;  %v539_v15 = vand.u32 2147483648, %v410_v14  ;;  %vm533_vm1 = vweird.f32 %v410_v14  ;;  %v537_v20 = vand.u32 2147483647, %v410_v14 }
 0x111   : > { %2520 = vrcp.f32 %v404_v13  ;;  %v509_v38 = vand.u32 2147483648, %v404_v13  ;;  %v507_v19 = vand.u32 2147483647, %v404_v13  ;;  %vm503_vm4 = vweird.f32 %v404_v13 }
 0x112   : > { %v540_v27 = vor.u32 1.1754944e-38, %v539_v15  ;;  %vm538_vm7 = vcmp.eq.f32.partialorder %v537_v20, 8.507059e+37 }
 0x113   : > { %v510_v46 = vor.u32 1.1754944e-38, %v509_v38  ;;  %vm508_vm8 = vcmp.eq.f32.partialorder %v507_v19, 8.507059e+37 }
 0x116   : > { %v2519_v30 = vpop.eup %2518 }
 0x117   : > { %v2521_v32 = vpop.eup %2520  ;;  %v529_v59 = vmul.f32 %v2519_v30, %v410_v14  ;;  %v3160_v48 = vpop.xlane.xlu1 %418  ;;  %vm534_vm2 = vweird.f32 %v2519_v30 }
 0x118   : > { %v499_v50 = vmul.f32 %v2521_v32, %v404_v13  ;;  %2522 = vrcp.f32 %v3160_v48  ;;  %v3163_v31 = vpop.xlane.xlu2 %412  ;;  %vm504_vm3 = vweird.f32 %v2521_v32  ;;  %vm535_vm5 = vmor %vm533_vm1, %vm534_vm2  ;;  %vm578_vm9 = vweird.f32 %v3160_v48 }
 0x119   : > { %v3165_v49 = vpop.xlane.xlu0 %406  ;;  %v530_v4 = vsub.f32 1.0, %v529_v59  ;;  %2524 = vrcp.f32 %v3163_v31  ;;  %vm3175_vm6 = vmor %vm503_vm4, %vm504_vm3  ;;  %v552_v20 = vand.u32 2147483647, %v3163_v31  ;;  %vm548_vm12 = vweird.f32 %v3163_v31 }
 0x11a   : > { %v500_v9 = vsub.f32 1.0, %v499_v50  ;;  %2526 = vrcp.f32 %v3165_v49  ;;  %v522_v59 = vand.u32 2147483647, %v3165_v49  ;;  %v524_v15 = vand.u32 2147483648, %v3165_v49 }
 0x11b   : > { %v531_v18 = vmul.f32 %v2519_v30, %v530_v4  ;;  %vm518_vm10 = vweird.f32 %v3165_v49  ;;  %vm3231_vm15 = vcmp.eq.f32.partialorder %v552_v20, 8.507059e+37 }
 0x11c   : > { %v501_v36 = vmul.f32 %v2521_v32, %v500_v9  ;;  %vm3212_vm13 = vcmp.eq.f32.partialorder %v522_v59, 8.507059e+37 }
 0x11d   : > { %v532_v54 = vadd.f32 %v2519_v30, %v531_v18 }
 0x11e   : > { %v3169_v56 = vpop.eup %2522  ;;  %v502_v37 = vadd.f32 %v2521_v32, %v501_v36 }
 0x11f   : > { %v3171_v28 = vpop.eup %2524  ;;  %v3173_v6 = vpop.xlane.xlu1 %427  ;;  %v536_v26 = vsel %vm535_vm5, %v2519_v30, %v532_v54  ;;  %v574_v50 = vmul.f32 %v3169_v56, %v3160_v48  ;;  %vm579_vm4 = vweird.f32 %v3169_v56 }
 0x120   : > { %v2527_v8 = vpop.eup %2526  ;;  %v544_v42 = vmul.f32 %v3171_v28, %v3163_v31  ;;  %v3181_v61 = vpop.xlane.xlu2 %421  ;;  %v506_v43 = vsel %vm3175_vm6, %v2521_v32, %v502_v37  ;;  %v541_v52 = vsel %vm538_vm7, %v540_v27, %v536_v26  ;;  %v554_v37 = vand.u32 2147483648, %v3163_v31  ;;  %vm3284_vm7 = vmor %vm578_vm9, %vm579_vm4 }
 0x121   : > { %v3183_v25 = vpop.xlane.xlu0 %415  ;;  %v514_v14 = vmul.f32 %v2527_v8, %v3165_v49  ;;  %2528 = vrcp.f32 %v3181_v61  ;;  %v511_v30 = vsel %vm508_vm8, %v510_v46, %v506_v43  ;;  %v3197_v32 = vmul.f32 %v3006_v33, %v541_v52 }
 0x122   : > { %v545_v13 = vsub.f32 1.0, %v544_v42  ;;  %2530 = vrcp.f32 %v3183_v25  ;;  %v3194_v9 = vmul.f32 %v3008_v34, %v511_v30  ;;  %vm519_vm11 = vweird.f32 %v2527_v8 }
 0x123   : > { %v515_v4 = vsub.f32 1.0, %v514_v14  ;;  %5135 = vst [vmem:[#allocation11_spill] sm:$0xff] %v3197_v32  ;;  %2532 = vrcp.f32 %v3173_v6  ;;  %990 = vperm.xlu0 %2444, %v3197_v32   ;;  %v575_v36 = vsub.f32 1.0, %v574_v50  ;;  %v525_v43 = vor.u32 1.1754944e-38, %v524_v15  ;;  %vm520_vm14 = vmor %vm518_vm10, %vm519_vm11 }
 0x124   : > { %5134 = vst [vmem:[#allocation10_spill] sm:$0xff] %v3194_v9  ;;  %980 = vperm.xlu1 %2442, %v3194_v9   ;;  %v546_v34 = vmul.f32 %v3171_v28, %v545_v13  ;;  %v582_v46 = vand.u32 2147483647, %v3160_v48  ;;  %v584_v52 = vand.u32 2147483648, %v3160_v48  ;;  %v569_v13 = vand.u32 2147483648, %v3183_v25 }
 0x125   : > { %v516_v18 = vmul.f32 %v2527_v8, %v515_v4  ;;  %vm549_vm0 = vweird.f32 %v3171_v28  ;;  %v576_v49 = vmul.f32 %v3169_v56, %v575_v36  ;;  %v555_v9 = vor.u32 1.1754944e-38, %v554_v37 }
 0x126   : > { %v547_v50 = vadd.f32 %v3171_v28, %v546_v34  ;;  %v567_v41 = vand.u32 2147483647, %v3183_v25  ;;  %vm3247_vm1 = vcmp.eq.f32.partialorder %v582_v46, 8.507059e+37  ;;  %vm563_vm2 = vweird.f32 %v3183_v25  ;;  %vm3254_vm3 = vmor %vm548_vm12, %vm549_vm0 }
 0x127   : > { %v3208_v33 = vpop.eup %2528  ;;  %v3210_v38 = vpop.xlane.xlu1 %436  ;;  %v517_v19 = vadd.f32 %v2527_v8, %v516_v18  ;;  %v570_v36 = vor.u32 1.1754944e-38, %v569_v13  ;;  %vm593_vm8 = vweird.f32 %v3181_v61  ;;  %vm623_vm9 = vweird.f32 %v3173_v6 }
 0x128   : > { %v2531_v27 = vpop.eup %2530  ;;  %v589_v24 = vmul.f32 %v3208_v33, %v3181_v61  ;;  %v3219_v26 = vpop.xlane.xlu2 %430  ;;  %v551_v54 = vsel %vm3254_vm3, %v3171_v28, %v547_v50  ;;  %vm568_vm6 = vcmp.eq.f32.partialorder %v567_v41, 8.507059e+37  ;;  %v597_v50 = vand.u32 2147483647, %v3181_v61 }
 0x129   : > { %v3221_v42 = vpop.xlane.xlu0 %424  ;;  %v559_v14 = vmul.f32 %v2531_v27, %v3183_v25  ;;  %2534 = vrcp.f32 %v3219_v26  ;;  %v521_v59 = vsel %vm520_vm14, %v2527_v8, %v517_v19  ;;  %v3238_v4 = vpop.eup %2532  ;;  %vm564_vm5 = vweird.f32 %v2531_v27 }
 0x12a   : > { %2536 = vrcp.f32 %v3221_v42  ;;  %v590_v15 = vsub.f32 1.0, %v589_v24  ;;  %v526_v32 = vsel %vm3212_vm13, %v525_v43, %v521_v59  ;;  %v577_v43 = vadd.f32 %v3169_v56, %v576_v49  ;;  %vm565_vm10 = vmor %vm563_vm2, %vm564_vm5 }
 0x12b   : > { %v560_v18 = vsub.f32 1.0, %v559_v14  ;;  %v3244_v20 = vmul.f32 %v3023_v57, %v526_v32  ;;  %v585_v57 = vor.u32 1.1754944e-38, %v584_v52  ;;  %v619_v32 = vmul.f32 %v3238_v4, %v3173_v6 }
 0x12c   : > { %2538 = vrcp.f32 %v3210_v38  ;;  %v591_v46 = vmul.f32 %v3208_v33, %v590_v15  ;;  %v556_v15 = vsel %vm3231_vm15, %v555_v9, %v551_v54  ;;  %vm594_vm11 = vweird.f32 %v3208_v33 }
 0x12d   : > { %5140 = vst [vmem:[#allocation12_spill] sm:$0xff] %v3244_v20  ;;  %v561_v34 = vmul.f32 %v2531_v27, %v560_v18  ;;  %985 = vperm.xlu2 %2443, %v3244_v20   ;;  %v599_v41 = vand.u32 2147483648, %v3181_v61  ;;  %v620_v48 = vsub.f32 1.0, %v619_v32  ;;  %v614_v49 = vand.u32 2147483648, %v3221_v42  ;;  %vm3323_vm14 = vmor %vm593_vm8, %vm594_vm11 }
 0x12e   : > { %v581_v25 = vsel %vm3284_vm7, %v3169_v56, %v577_v43  ;;  %v592_v9 = vadd.f32 %v3208_v33, %v591_v46  ;;  %v3307_v54 = vmul.f32 %v3019_v51, %v556_v15  ;;  %vm638_vm12 = vweird.f32 %v3219_v26 }
 0x12f   : > { %v3265_v37 = vpop.eup %2534  ;;  %v3268_v31 = vpop.xlane.xlu1 %445  ;;  %v562_v24 = vadd.f32 %v2531_v27, %v561_v34  ;;  %v642_v56 = vand.u32 2147483647, %v3219_v26  ;;  %vm3327_vm15 = vcmp.eq.f32.partialorder %v597_v50, 8.507059e+37  ;;  %vm608_vm0 = vweird.f32 %v3221_v42 }
 0x130   : > { %v3272_v52 = vpop.eup %2536  ;;  %v634_v14 = vmul.f32 %v3265_v37, %v3219_v26  ;;  %v3276_v13 = vpop.xlane.xlu2 %439  ;;  %5147 = vst [vmem:[#allocation13_spill] sm:$0xff] %v3307_v54  ;;  %vm639_vm13 = vweird.f32 %v3265_v37  ;;  %v586_v61 = vsel %vm3247_vm1, %v585_v57, %v581_v25  ;;  %v596_v43 = vsel %vm3323_vm14, %v3208_v33, %v592_v9 }
 0x131   : > { %v3278_v28 = vpop.xlane.xlu0 %433  ;;  %2540 = vrcp.f32 %v3276_v13  ;;  %v566_v34 = vsel %vm565_vm10, %v2531_v27, %v562_v24  ;;  %v604_v19 = vmul.f32 %v3272_v52, %v3221_v42  ;;  %v644_v24 = vand.u32 2147483648, %v3219_v26  ;;  %vm3363_vm1 = vmor %vm638_vm12, %vm639_vm13 }
 0x132   : > { %v635_v18 = vsub.f32 1.0, %v634_v14  ;;  %v571_v30 = vsel %vm568_vm6, %v570_v36, %v566_v34  ;;  %v3314_v14 = vpop.eup %2538  ;;  %v3332_v36 = vor.u32 1.1754944e-38, %v614_v49  ;;  %2542 = vrcp.f32 %v3278_v28 }
 0x133   : > { %v3310_v32 = vmul.f32 %v3029_v62, %v571_v30  ;;  %v605_v59 = vsub.f32 1.0, %v604_v19  ;;  %v621_v49 = vmul.f32 %v3238_v4, %v620_v48  ;;  %v3350_v34 = vmul.f32 %v3314_v14, %v3210_v38 }
 0x134   : > { %v636_v27 = vmul.f32 %v3265_v37, %v635_v18  ;;  %v600_v18 = vor.u32 1.1754944e-38, %v599_v41  ;;  %2544 = vrcp.f32 %v3268_v31  ;;  %v645_v48 = vor.u32 1.1754944e-38, %v644_v24 }
 0x135   : > { %5148 = vst [vmem:[#allocation14_spill] sm:$0xff] %v3310_v32  ;;  %995 = vperm.xlu2 %2443, %v3307_v54   ;;  %1000 = vperm.xlu1 %2442, %v3310_v32   ;;  %vm643_vm2 = vcmp.eq.f32.partialorder %v642_v56, 8.507059e+37  ;;  %v3369_v19 = vmul.f32 %v3016_v45, %v586_v61  ;;  %vm683_vm3 = vweird.f32 %v3276_v13  ;;  %v689_v9 = vand.u32 2147483648, %v3276_v13 }
 0x136   : > { %v637_v15 = vadd.f32 %v3265_v37, %v636_v27  ;;  %v601_v30 = vsel %vm3327_vm15, %v600_v18, %v596_v43  ;;  %vm624_vm4 = vweird.f32 %v3238_v4  ;;  %v606_v26 = vmul.f32 %v3272_v52, %v605_v59 }
 0x137   : > { %v3342_v46 = vpop.eup %2540  ;;  %v3344_v50 = vpop.xlane.xlu1 %454  ;;  %5155 = vst [vmem:[#allocation15_spill] sm:$0xff] %v3369_v19  ;;  %v687_v24 = vand.u32 2147483647, %v3276_v13  ;;  %v622_v45 = vadd.f32 %v3238_v4, %v621_v49  ;;  %v3385_v62 = vmul.f32 %v3036_v11, %v601_v30  ;;  %v627_v43 = vand.u32 2147483647, %v3173_v6  ;;  %vm3396_vm6 = vmor %vm623_vm9, %vm624_vm4 }
 0x138   : > { %v679_v8 = vmul.f32 %v3342_v46, %v3276_v13  ;;  %v3355_v33 = vpop.xlane.xlu2 %448  ;;  %v641_v27 = vsel %vm3363_vm1, %v3265_v37, %v637_v15  ;;  %v3382_v56 = vpop.eup %2542  ;;  %vm684_vm5 = vweird.f32 %v3342_v46  ;;  %v629_v11 = vand.u32 2147483648, %v3173_v6 }
 0x139   : > { %v3357_v57 = vpop.xlane.xlu0 %442  ;;  %2546 = vrcp.f32 %v3355_v33  ;;  %v646_v51 = vsel %vm643_vm2, %v645_v48, %v641_v27  ;;  %5156 = vst [vmem:[#allocation16_spill] sm:$0xff] %v3385_v62  ;;  %v665_v18 = vsub.f32 1.0, %v3350_v34  ;;  %v659_v49 = vand.u32 2147483648, %v3278_v28  ;;  %vm3427_vm8 = vmor %vm683_vm3, %vm684_vm5 }
 0x13a   : > { %v680_v25 = vsub.f32 1.0, %v679_v8  ;;  %2548 = vrcp.f32 %v3344_v50  ;;  %v3391_v59 = vmul.f32 %v3051_v35, %v646_v51  ;;  %v3401_v15 = vpop.eup %2544  ;;  %v690_v35 = vor.u32 1.1754944e-38, %v689_v9 }
 0x13b   : > { %vm609_vm7 = vweird.f32 %v3272_v52  ;;  %v649_v41 = vmul.f32 %v3382_v56, %v3278_v28  ;;  %2550 = vrcp.f32 %v3357_v57  ;;  %v630_v48 = vor.u32 1.1754944e-38, %v629_v11 }
 0x13c   : > { %v681_v61 = vmul.f32 %v3342_v46, %v680_v25  ;;  %5157 = vst [vmem:[#allocation17_spill] sm:$0xff] %v3391_v59  ;;  %1025 = vperm.xlu0 %2444, %v3391_v59   ;;  %v626_v51 = vsel %vm3396_vm6, %v3238_v4, %v622_v45  ;;  %vm628_vm10 = vcmp.eq.f32.partialorder %v627_v43, 8.507059e+37  ;;  %v3437_v11 = vmul.f32 %v3401_v15, %v3268_v31  ;;  %vm3444_vm9 = vmor %vm608_vm0, %vm609_vm7 }
 0x13d   : > { %1005 = vperm.xlu2 %2443, %v3369_v19   ;;  %1010 = vperm.xlu1 %2442, %v3385_v62   ;;  %vm688_vm11 = vcmp.eq.f32.partialorder %v687_v24, 8.507059e+37  ;;  %v612_v4 = vand.u32 2147483647, %v3221_v42  ;;  %v764_v45 = vand.u32 2147483648, %v3344_v50  ;;  %v704_v43 = vand.u32 2147483648, %v3357_v57 }
 0x13e   : > { %v682_v34 = vadd.f32 %v3342_v46, %v681_v61  ;;  %v607_v61 = vadd.f32 %v3272_v52, %v606_v26  ;;  %v650_v24 = vsub.f32 1.0, %v649_v41  ;;  %v631_v19 = vsel %vm628_vm10, %v630_v48, %v626_v51 }
 0x13f   : > { %v3408_v8 = vpop.eup %2546  ;;  %v3414_v6 = vpop.xlane.xlu1 %463  ;;  %vm728_vm12 = vweird.f32 %v3355_v33  ;;  %v3460_v54 = vmul.f32 %v3033_v5, %v631_v19  ;;  %vm613_vm13 = vcmp.eq.f32.partialorder %v612_v4, 8.507059e+37  ;;  %vm653_vm15 = vweird.f32 %v3278_v28 }
 0x140   : > { %v724_v30 = vmul.f32 %v3408_v8, %v3355_v33  ;;  %v3419_v25 = vpop.xlane.xlu2 %457  ;;  %2552 = vrcp.f32 %v3414_v6  ;;  %v3452_v37 = vpop.eup %2548  ;;  %v686_v32 = vsel %vm3427_vm8, %v3342_v46, %v682_v34  ;;  %v734_v34 = vand.u32 2147483648, %v3355_v33 }
 0x141   : > { %v3421_v9 = vpop.xlane.xlu0 %451  ;;  %2554 = vrcp.f32 %v3419_v25  ;;  %v691_v42 = vsel %vm688_vm11, %v690_v35, %v686_v32  ;;  %5164 = vst [vmem:[#allocation18_spill] sm:$0xff] %v3460_v54  ;;  %v3465_v59 = vpop.eup %2550  ;;  %v3474_v32 = vmul.f32 %v3452_v37, %v3344_v50  ;;  %vm729_vm14 = vweird.f32 %v3408_v8 }
 0x142   : > { %v725_v26 = vsub.f32 1.0, %v724_v30  ;;  %2556 = vrcp.f32 %v3421_v9  ;;  %v611_v30 = vsel %vm3444_vm9, %v3272_v52, %v607_v61  ;;  %v3468_v41 = vmul.f32 %v3066_v12, %v691_v42  ;;  %vm3508_vm0 = vmor %vm728_vm12, %vm729_vm14 }
 0x143   : > { %v616_v5 = vsel %vm613_vm13, %v3332_v36, %v611_v30  ;;  %v732_v52 = vand.u32 2147483647, %v3355_v33  ;;  %v809_v12 = vand.u32 2147483648, %v3414_v6  ;;  %v660_v36 = vor.u32 1.1754944e-38, %v659_v49 }
 0x144   : > { %5165 = vst [vmem:[#allocation19_spill] sm:$0xff] %v3468_v41  ;;  %v726_v46 = vmul.f32 %v3408_v8, %v725_v26  ;;  %1040 = vperm.xlu0 %2444, %v3468_v41   ;;  %v3485_v35 = vmul.f32 %v3044_v22, %v616_v5  ;;  %v666_v4 = vmul.f32 %v3314_v14, %v665_v18  ;;  %v3499_v42 = vor.u32 1.1754944e-38, %v764_v45 }
 0x145   : > { %1020 = vperm.xlu1 %2442, %v3460_v54   ;;  %v3501_v22 = vor.u32 1.1754944e-38, %v704_v43  ;;  %v735_v30 = vor.u32 1.1754944e-38, %v734_v34  ;;  %v651_v18 = vmul.f32 %v3382_v56, %v650_v24  ;;  %v755_v45 = vsub.f32 1.0, %v3474_v32 }
 0x146   : > { %v3480_v19 = vpop.eup %2552  ;;  %5166 = vst [vmem:[#allocation20_spill] sm:$0xff] %v3485_v35  ;;  %v727_v13 = vadd.f32 %v3408_v8, %v726_v46  ;;  %1015 = vperm.xlu2 %2443, %v3485_v35   ;;  %v694_v43 = vmul.f32 %v3465_v59, %v3357_v57  ;;  %vm733_vm1 = vcmp.eq.f32.partialorder %v732_v52, 8.507059e+37  ;;  %v3520_v26 = vor.u32 1.1754944e-38, %v809_v12 }
 0x147   : > { %v3487_v48 = vpop.xlane.xlu1 %472  ;;  %v3489_v27 = vpop.eup %2554  ;;  %v799_v5 = vmul.f32 %v3480_v19, %v3414_v6  ;;  %v749_v34 = vand.u32 2147483648, %v3421_v9  ;;  %v667_v32 = vadd.f32 %v3314_v14, %v666_v4  ;;  %vm668_vm2 = vweird.f32 %v3210_v38 }
 0x148   : > { %v3492_v51 = vpop.xlane.xlu2 %466  ;;  %v3512_v46 = vpop.eup %2556  ;;  %v769_v33 = vmul.f32 %v3489_v27, %v3419_v25  ;;  %2558 = vrcp.f32 %v3487_v48  ;;  %v731_v24 = vsel %vm3508_vm0, %v3408_v8, %v727_v13  ;;  %vm669_vm3 = vweird.f32 %v3314_v14 }
 0x149   : > { %v3494_v61 = vpop.xlane.xlu0 %460  ;;  %v739_v52 = vmul.f32 %v3512_v46, %v3421_v9  ;;  %2560 = vrcp.f32 %v3492_v51  ;;  %v736_v12 = vsel %vm733_vm1, %v735_v30, %v731_v24  ;;  %vm3538_vm4 = vmor %vm668_vm2, %vm669_vm3  ;;  %v672_v8 = vand.u32 2147483647, %v3210_v38 }
 0x14a   : > { %v3536_v35 = vmul.f32 %v3081_v17, %v736_v12  ;;  %v674_v13 = vand.u32 2147483648, %v3210_v38  ;;  %v652_v4 = vadd.f32 %v3382_v56, %v651_v18  ;;  %2562 = vrcp.f32 %v3494_v61 }
 0x14b   : > { %v671_v49 = vsel %vm3538_vm4, %v3314_v14, %v667_v32  ;;  %vm654_vm5 = vweird.f32 %v3382_v56  ;;  %v657_v17 = vand.u32 2147483647, %v3278_v28  ;;  %v695_v30 = vsub.f32 1.0, %v694_v43 }
 0x14c   : > { %5169 = vst [vmem:[#allocation21_spill] sm:$0xff] %v3536_v35  ;;  %v854_v24 = vand.u32 2147483648, %v3487_v48  ;;  %1055 = vperm.xlu0 %2444, %v3536_v35   ;;  %vm673_vm6 = vcmp.eq.f32.partialorder %v672_v8, 8.507059e+37  ;;  %v675_v12 = vor.u32 1.1754944e-38, %v674_v13  ;;  %vm655_vm7 = vmor %vm653_vm15, %vm654_vm5  ;;  %v800_v18 = vsub.f32 1.0, %v799_v5 }
 0x14d   : > { %v770_v41 = vsub.f32 1.0, %v769_v33  ;;  %v656_v54 = vsel %vm655_vm7, %v3382_v56, %v652_v4  ;;  %vm658_vm8 = vcmp.eq.f32.partialorder %v657_v17, 8.507059e+37  ;;  %v740_v43 = vsub.f32 1.0, %v739_v52 }
 0x14e   : > { %v3560_v32 = vpop.eup %2558  ;;  %v824_v62 = vand.u32 2147483648, %v3492_v51  ;;  %v676_v35 = vsel %vm673_vm6, %v675_v12, %v671_v49  ;;  %v661_v8 = vsel %vm658_vm8, %v660_v36, %v656_v54  ;;  %vm698_vm10 = vweird.f32 %v3357_v57 }
 0x14f   : > { %v3555_v38 = vpop.xlane.xlu1 %481  ;;  %v3565_v28 = vpop.eup %2560  ;;  %v794_v5 = vand.u32 2147483648, %v3494_v61  ;;  %v3570_v56 = vmul.f32 %v3048_v29, %v676_v35  ;;  %v3573_v33 = vmul.f32 %v3059_v39, %v661_v8  ;;  %v3577_v52 = vmul.f32 %v3452_v37, %v755_v45 }
 0x150   : > { %v3558_v14 = vpop.xlane.xlu2 %475  ;;  %2564 = vrcp.f32 %v3555_v38  ;;  %v696_v36 = vmul.f32 %v3465_v59, %v695_v30  ;;  %v3580_v4 = vor.u32 1.1754944e-38, %v749_v34  ;;  %v3583_v49 = vpop.eup %2562  ;;  %v3586_v17 = vmul.f32 %v3480_v19, %v800_v18 }
 0x151   : > { %v3563_v13 = vpop.xlane.xlu0 %469  ;;  %5172 = vst [vmem:[#allocation22_spill] sm:$0xff] %v3570_v56  ;;  %2566 = vrcp.f32 %v3558_v14  ;;  %v844_v29 = vmul.f32 %v3560_v32, %v3487_v48  ;;  %v3590_v39 = vor.u32 1.1754944e-38, %v854_v24  ;;  %1035 = vperm.xlu1 %2442, %v3570_v56   ;;  %1030 = vperm.xlu2 %2443, %v3573_v33   ;;  %v3596_v35 = vmul.f32 %v3512_v46, %v740_v43 }
 0x152   : > { %5173 = vst [vmem:[#allocation23_spill] sm:$0xff] %v3573_v33  ;;  %2568 = vrcp.f32 %v3563_v13  ;;  %v3598_v45 = vor.u32 1.1754944e-38, %v824_v62  ;;  %v771_v34 = vmul.f32 %v3489_v27, %v770_v41  ;;  %vm773_vm11 = vweird.f32 %v3419_v25 }
 0x153   : > { %v814_v30 = vmul.f32 %v3565_v28, %v3492_v51  ;;  %v3604_v24 = vor.u32 1.1754944e-38, %v794_v5  ;;  %vm774_vm9 = vweird.f32 %v3489_v27  ;;  %v777_v12 = vand.u32 2147483647, %v3419_v25 }
 0x154   : > { %v784_v18 = vmul.f32 %v3583_v49, %v3494_v61  ;;  %v772_v54 = vadd.f32 %v3489_v27, %v771_v34  ;;  %vm3611_vm12 = vmor %vm773_vm11, %vm774_vm9  ;;  %v779_v41 = vand.u32 2147483648, %v3419_v25  ;;  %v5176_v43 = vsub.f32 1.0, %v3437_v11 }
 0x155   : > { %v845_v33 = vsub.f32 1.0, %v844_v29  ;;  %vm818_vm13 = vweird.f32 %v3492_v51  ;;  %vm3622_vm14 = vcmp.eq.f32.partialorder %v777_v12, 8.507059e+37  ;;  %vm713_vm15 = vweird.f32 %v3268_v31 }
 0x156   : > { %v711_v8 = vmul.f32 %v3401_v15, %v5176_v43  ;;  %v3619_v5 = vpop.eup %2564  ;;  %vm714_vm0 = vweird.f32 %v3401_v15  ;;  %vm758_vm1 = vweird.f32 %v3344_v50  ;;  %v776_v25 = vsel %vm3611_vm12, %v3489_v27, %v772_v54 }
 0x157   : > { %v3628_v34 = vpop.eup %2566  ;;  %v780_v11 = vor.u32 1.1754944e-38, %v779_v41  ;;  %vm3635_vm2 = vmor %vm713_vm15, %vm714_vm0  ;;  %v717_v43 = vand.u32 2147483647, %v3268_v31  ;;  %v815_v44 = vsub.f32 1.0, %v814_v30  ;;  %v719_v55 = vand.u32 2147483648, %v3268_v31  ;;  %v3682_v12 = vpop.xlane.xlu1 %490 }
 0x158   : > { %v712_v29 = vadd.f32 %v3401_v15, %v711_v8  ;;  %v3640_v20 = vpop.eup %2568  ;;  %v859_v1 = vmul.f32 %v3628_v34, %v3558_v14  ;;  %v697_v62 = vadd.f32 %v3465_v59, %v696_v36  ;;  %v3646_v27 = vpop.xlane.xlu2 %484  ;;  %vm743_vm3 = vweird.f32 %v3421_v9 }
 0x159   : > { %v785_v54 = vsub.f32 1.0, %v784_v18  ;;  %v781_v41 = vsel %vm3622_vm14, %v780_v11, %v776_v25  ;;  %vm718_vm4 = vcmp.eq.f32.partialorder %v717_v43, 8.507059e+37  ;;  %v899_v30 = vand.u32 2147483648, %v3555_v38 }
 0x15a   : > { %v716_v8 = vsel %vm3635_vm2, %v3401_v15, %v712_v29  ;;  %v3656_v16 = vmul.f32 %v3096_v0, %v781_v41  ;;  %v720_v31 = vor.u32 1.1754944e-38, %v719_v55  ;;  %vm699_vm5 = vweird.f32 %v3465_v59  ;;  %v3675_v55 = vpop.xlane.xlu0 %478 }
 0x15b   : > { %v3660_v36 = vmul.f32 %v3560_v32, %v845_v33  ;;  %v889_v56 = vmul.f32 %v3619_v5, %v3555_v38  ;;  %v3666_v18 = vmul.f32 %v3640_v20, %v3563_v13  ;;  %vm3670_vm6 = vmor %vm698_vm10, %vm699_vm5  ;;  %v702_v0 = vand.u32 2147483647, %v3357_v57 }
 0x15c   : > { %v816_v33 = vmul.f32 %v3565_v28, %v815_v44  ;;  %v860_v25 = vsub.f32 1.0, %v859_v1  ;;  %1070 = vperm.xlu0 %2444, %v3656_v16   ;;  %v721_v11 = vsel %vm718_vm4, %v720_v31, %v716_v8  ;;  %v701_v29 = vsel %vm3670_vm6, %v3465_v59, %v697_v62 }
 0x15d   : > { %v3685_v43 = vmul.f32 %v3583_v49, %v785_v54  ;;  %v3688_v41 = vmul.f32 %v3063_v47, %v721_v11  ;;  %vm703_vm7 = vcmp.eq.f32.partialorder %v702_v0, 8.507059e+37  ;;  %2570 = vrcp.f32 %v3646_v27 }
 0x15e   : > { %v3691_v44 = vor.u32 1.1754944e-38, %v899_v30  ;;  %v869_v1 = vand.u32 2147483648, %v3558_v14  ;;  %v839_v57 = vand.u32 2147483648, %v3563_v13  ;;  %v706_v8 = vsel %vm703_vm7, %v3501_v22, %v701_v29 }
 0x15f   : > { %v890_v59 = vsub.f32 1.0, %v889_v56  ;;  %vm863_vm8 = vweird.f32 %v3558_v14  ;;  %v830_v62 = vsub.f32 1.0, %v3666_v18  ;;  %1050 = vperm.xlu1 %2442, %v3688_v41   ;;  %v3700_v47 = vmul.f32 %v3074_v63, %v706_v8 }
 0x160   : > { %2572 = vrcp.f32 %v3682_v12  ;;  %v861_v54 = vmul.f32 %v3628_v34, %v860_v25  ;;  %v817_v30 = vadd.f32 %v3565_v28, %v816_v33  ;;  %vm819_vm10 = vweird.f32 %v3565_v28  ;;  %v3723_v15 = vpop.xlane.xlu2 %493 }
 0x161   : > { %v822_v22 = vand.u32 2147483647, %v3492_v51  ;;  %vm803_vm11 = vweird.f32 %v3414_v6  ;;  %1045 = vperm.xlu2 %2443, %v3700_v47   ;;  %2574 = vrcp.f32 %v3675_v55  ;;  %vm820_vm9 = vmor %vm818_vm13, %vm819_vm10  ;;  %v757_v63 = vadd.f32 %v3452_v37, %v3577_v52 }
 0x162   : > { %vm759_vm12 = vweird.f32 %v3452_v37  ;;  %v762_v31 = vand.u32 2147483647, %v3344_v50  ;;  %vm788_vm14 = vweird.f32 %v3494_v61  ;;  %v914_v56 = vand.u32 2147483648, %v3646_v27 }
 0x163   : > { %v821_v18 = vsel %vm820_vm9, %v3565_v28, %v817_v30  ;;  %vm823_vm15 = vcmp.eq.f32.partialorder %v822_v22, 8.507059e+37  ;;  %vm760_vm0 = vmor %vm758_vm1, %vm759_vm12  ;;  %v742_v51 = vadd.f32 %v3512_v46, %v3596_v35  ;;  %v3725_v52 = vpop.eup %2570  ;;  %vm744_vm2 = vweird.f32 %v3512_v46 }
 0x164   : > { %v826_v0 = vsel %vm823_vm15, %v3598_v45, %v821_v18  ;;  %v761_v33 = vsel %vm760_vm0, %v3452_v37, %v757_v63  ;;  %vm763_vm13 = vcmp.eq.f32.partialorder %v762_v31, 8.507059e+37  ;;  %v904_v28 = vmul.f32 %v3725_v52, %v3646_v27  ;;  %vm3739_vm1 = vmor %vm743_vm3, %vm744_vm2 }
 0x165   : > { %v884_v50 = vand.u32 2147483648, %v3675_v55  ;;  %v3734_v25 = vmul.f32 %v3111_v58, %v826_v0  ;;  %v766_v35 = vsel %vm763_vm13, %v3499_v42, %v761_v33  ;;  %v746_v29 = vsel %vm3739_vm1, %v3512_v46, %v742_v51  ;;  %v3753_v42 = vpop.xlane.xlu0 %487 }
 0x166   : > { %v3743_v37 = vpop.eup %2572  ;;  %v3746_v45 = vmul.f32 %v3078_v10, %v766_v35  ;;  %v747_v58 = vand.u32 2147483647, %v3421_v9  ;;  %2576 = vrcp.f32 %v3723_v15  ;;  %v3756_v8 = vmul.f32 %v3619_v5, %v890_v59 }
 0x167   : > { %v870_v30 = vor.u32 1.1754944e-38, %v869_v1  ;;  %v3758_v22 = vor.u32 1.1754944e-38, %v839_v57  ;;  %v944_v63 = vand.u32 2147483648, %v3682_v12  ;;  %1085 = vperm.xlu0 %2444, %v3734_v25   ;;  %v3762_v10 = vpop.eup %2574  ;;  %v3765_v46 = vmul.f32 %v3640_v20, %v830_v62 }
 0x168   : > { %vm908_vm3 = vweird.f32 %v3646_v27  ;;  %v3768_v9 = vor.u32 1.1754944e-38, %v914_v56  ;;  %1065 = vperm.xlu1 %2442, %v3746_v45   ;;  %vm748_vm4 = vcmp.eq.f32.partialorder %v747_v58, 8.507059e+37  ;;  %vm848_vm5 = vweird.f32 %v3487_v48 }
 0x169   : > { %v3774_v1 = vmul.f32 %v3743_v37, %v3682_v12  ;;  %v905_v57 = vsub.f32 1.0, %v904_v28  ;;  %v3776_v59 = vor.u32 1.1754944e-38, %v884_v50  ;;  %v751_v31 = vsel %vm748_vm4, %v3580_v4, %v746_v29 }
 0x16a   : > { %v3780_v62 = vmul.f32 %v3089_v23, %v751_v31  ;;  %2578 = vrcp.f32 %v3753_v42  ;;  %v862_v56 = vadd.f32 %v3628_v34, %v861_v54  ;;  %vm864_vm6 = vweird.f32 %v3628_v34 }
 0x16b   : > { %vm833_vm7 = vweird.f32 %v3563_v13  ;;  %v874_v18 = vmul.f32 %v3762_v10, %v3675_v55  ;;  %v959_v51 = vand.u32 2147483648, %v3723_v15  ;;  %vm3791_vm10 = vmor %vm863_vm8, %vm864_vm6  ;;  %v867_v23 = vand.u32 2147483647, %v3558_v14 }
 0x16c   : > { %v802_v54 = vadd.f32 %v3480_v19, %v3586_v17  ;;  %v3798_v0 = vpop.eup %2576  ;;  %1060 = vperm.xlu2 %2443, %v3780_v62   ;;  %v866_v33 = vsel %vm3791_vm10, %v3628_v34, %v862_v56  ;;  %vm804_vm9 = vweird.f32 %v3480_v19  ;;  %v807_v28 = vand.u32 2147483647, %v3414_v6 }
 0x16d   : > { %v787_v50 = vadd.f32 %v3583_v49, %v3685_v43  ;;  %v949_v14 = vmul.f32 %v3798_v0, %v3723_v15  ;;  %vm868_vm8 = vcmp.eq.f32.partialorder %v867_v23, 8.507059e+37  ;;  %vm805_vm12 = vmor %vm803_vm11, %vm804_vm9  ;;  %vm789_vm15 = vweird.f32 %v3583_v49  ;;  %v3837_v31 = vpop.xlane.xlu0 %496 }
 0x16e   : > { %v792_v17 = vand.u32 2147483647, %v3494_v61  ;;  %v906_v34 = vmul.f32 %v3725_v52, %v905_v57  ;;  %v871_v35 = vsel %vm868_vm8, %v870_v30, %v866_v33  ;;  %v806_v11 = vsel %vm805_vm12, %v3480_v19, %v802_v54  ;;  %vm3818_vm13 = vmor %vm788_vm14, %vm789_vm15 }
 0x16f   : > { %vm808_vm0 = vcmp.eq.f32.partialorder %v807_v28, 8.507059e+37  ;;  %vm893_vm2 = vweird.f32 %v3555_v38  ;;  %v935_v6 = vsub.f32 1.0, %v3774_v1  ;;  %v950_v29 = vsub.f32 1.0, %v949_v14 }
 0x170   : > { %v3825_v58 = vmul.f32 %v3126_v21, %v871_v35  ;;  %v811_v57 = vsel %vm808_vm0, %v3520_v26, %v806_v11  ;;  %v3828_v30 = vpop.eup %2578  ;;  %vm953_vm11 = vweird.f32 %v3723_v15  ;;  %v791_v61 = vsel %vm3818_vm13, %v3583_v49, %v787_v50  ;;  %v5202_v50 = vld [vmem:[#allocation10_spill] sm:$0xff] }
 0x171   : > { %v3832_v19 = vmul.f32 %v3093_v2, %v811_v57  ;;  %vm793_vm14 = vcmp.eq.f32.partialorder %v792_v17, 8.507059e+37  ;;  %v875_v1 = vsub.f32 1.0, %v874_v18  ;;  %vm878_vm1 = vweird.f32 %v3675_v55 }
 0x172   : > { %v951_v21 = vmul.f32 %v3798_v0, %v950_v29  ;;  %v960_v26 = vor.u32 1.1754944e-38, %v959_v51  ;;  %1100 = vperm.xlu0 %2444, %v3825_v58   ;;  %v796_v56 = vsel %vm793_vm14, %v3604_v24, %v791_v61  ;;  %v907_v49 = vadd.f32 %v3725_v52, %v906_v34 }
 0x173   : > { %1080 = vperm.xlu1 %2442, %v3832_v19   ;;  %v3845_v2 = vmul.f32 %v3104_v40, %v796_v56  ;;  %vm909_vm4 = vweird.f32 %v3725_v52  ;;  %v912_v18 = vand.u32 2147483647, %v3646_v27  ;;  %v919_v4 = vmul.f32 %v3828_v30, %v3753_v42 }
 0x174   : > { %2580 = vrcp.f32 %v3837_v31  ;;  %vm910_vm6 = vmor %vm908_vm3, %vm909_vm4  ;;  %v847_v24 = vadd.f32 %v3560_v32, %v3660_v36  ;;  %vm849_vm10 = vweird.f32 %v3560_v32  ;;  %vm938_vm9 = vweird.f32 %v3682_v12 }
 0x175   : > { %1075 = vperm.xlu2 %2443, %v3845_v2   ;;  %v911_v40 = vsel %vm910_vm6, %v3725_v52, %v907_v49  ;;  %vm913_vm8 = vcmp.eq.f32.partialorder %v912_v18, 8.507059e+37  ;;  %vm850_vm12 = vmor %vm848_vm5, %vm849_vm10  ;;  %v852_v51 = vand.u32 2147483647, %v3487_v48  ;;  %v832_v27 = vadd.f32 %v3640_v20, %v3765_v46 }
 0x176   : > { %v876_v23 = vmul.f32 %v3762_v10, %v875_v1  ;;  %v916_v36 = vsel %vm913_vm8, %v3768_v9, %v911_v40  ;;  %v851_v54 = vsel %vm850_vm12, %v3560_v32, %v847_v24  ;;  %vm834_vm3 = vweird.f32 %v3640_v20  ;;  %v5197_v40 = vld [vmem:[#allocation7_spill] sm:$0xff] }
 0x177   : > { %v3871_v33 = vmul.f32 %v3140_v7, %v916_v36  ;;  %vm853_vm15 = vcmp.eq.f32.partialorder %v852_v51, 8.507059e+37  ;;  %vm3875_vm5 = vmor %vm833_vm7, %vm834_vm3  ;;  %v837_v48 = vand.u32 2147483647, %v3563_v13  ;;  %v952_v46 = vadd.f32 %v3798_v0, %v951_v21 }
 0x178   : > { %v920_v28 = vsub.f32 1.0, %v919_v4  ;;  %v856_v9 = vsel %vm853_vm15, %v3590_v39, %v851_v54  ;;  %v836_v32 = vsel %vm3875_vm5, %v3640_v20, %v832_v27  ;;  %vm954_vm0 = vweird.f32 %v3798_v0  ;;  %v5199_v54 = vld [vmem:[#allocation12_spill] sm:$0xff] }
 0x179   : > { %v3887_v7 = vmul.f32 %v3108_v53, %v856_v9  ;;  %vm838_vm7 = vcmp.eq.f32.partialorder %v837_v48, 8.507059e+37  ;;  %vm3891_vm13 = vmor %vm953_vm11, %vm954_vm0  ;;  %v957_v13 = vand.u32 2147483647, %v3723_v15  ;;  %v892_v39 = vadd.f32 %v3619_v5, %v3756_v8 }
 0x17a   : > { %v3898_v14 = vpop.eup %2580  ;;  %v936_v20 = vmul.f32 %v3743_v37, %v935_v6  ;;  %1115 = vperm.xlu0 %2444, %v3871_v33   ;;  %v841_v53 = vsel %vm838_vm7, %v3758_v22, %v836_v32  ;;  %v956_v17 = vsel %vm3891_vm13, %v3798_v0, %v952_v46  ;;  %vm894_vm11 = vweird.f32 %v3619_v5  ;;  %v5201_v32 = vld [vmem:[#allocation16_spill] sm:$0xff] }
 0x17b   : > { %1095 = vperm.xlu1 %2442, %v3887_v7   ;;  %v3909_v15 = vmul.f32 %v3119_v3, %v841_v53  ;;  %vm958_vm14 = vcmp.eq.f32.partialorder %v957_v13, 8.507059e+37  ;;  %vm895_vm4 = vmor %vm893_vm2, %vm894_vm11  ;;  %v897_v8 = vand.u32 2147483647, %v3555_v38  ;;  %v877_v34 = vadd.f32 %v3762_v10, %v876_v23 }
 0x17c   : > { %v961_v22 = vsel %vm958_vm14, %v960_v26, %v956_v17  ;;  %v896_v35 = vsel %vm895_vm4, %v3619_v5, %v892_v39  ;;  %vm879_vm6 = vweird.f32 %v3762_v10  ;;  %v882_v0 = vand.u32 2147483647, %v3675_v55  ;;  %v5203_v39 = vld [vmem:[#allocation17_spill] sm:$0xff]  ;;  %v5206_v17 = vld [vmem:[#allocation19_spill] sm:$0xff] }
 0x17d   : > { %v921_v11 = vmul.f32 %v3828_v30, %v920_v28  ;;  %v964_v3 = vmul.f32 %v3898_v14, %v3837_v31  ;;  %1090 = vperm.xlu2 %2443, %v3909_v15   ;;  %v3923_v43 = vmul.f32 %v3150_v60, %v961_v22  ;;  %vm898_vm2 = vcmp.eq.f32.partialorder %v897_v8, 8.507059e+37  ;;  %vm880_vm10 = vmor %vm878_vm1, %vm879_vm6  ;;  %v5208_v22 = vld [vmem:[#allocation14_spill] sm:$0xff]  ;;  %v5213_v55 = vld [vmem:[#allocation23_spill] sm:$0xff] }
 0x17e   : > { %v901_v38 = vsel %vm898_vm2, %v3691_v44, %v896_v35  ;;  %v881_v5 = vsel %vm880_vm10, %v3762_v10, %v877_v34  ;;  %vm883_vm8 = vcmp.eq.f32.partialorder %v882_v0, 8.507059e+37  ;;  %vm939_vm12 = vweird.f32 %v3743_v37  ;;  %v5195_v10 = vld [vmem:[#allocation5_spill] sm:$0xff]  ;;  %v5207_v34 = vld [vmem:[#allocation15_spill] sm:$0xff] }
 0x17f   : > { %vm923_vm3 = vweird.f32 %v3753_v42  ;;  %v937_v6 = vadd.f32 %v3743_v37, %v936_v20  ;;  %v942_v29 = vand.u32 2147483647, %v3682_v12  ;;  %v929_v60 = vand.u32 2147483648, %v3753_v42  ;;  %vm3937_vm1 = vmor %vm938_vm9, %vm939_vm12  ;;  %v5204_v20 = vld [vmem:[#allocation13_spill] sm:$0xff] }
 0x180   : > { %v886_v57 = vsel %vm883_vm8, %v3776_v59, %v881_v5  ;;  %vm924_vm15 = vweird.f32 %v3828_v30  ;;  %v965_v44 = vsub.f32 1.0, %v964_v3  ;;  %v3943_v61 = vmul.f32 %v5195_v10, %v901_v38  ;;  %v5196_v59 = vld [vmem:[#allocation6_spill] sm:$0xff]  ;;  %v5211_v5 = vld [vmem:[#allocation20_spill] sm:$0xff] }
 0x181   : > { %v922_v1 = vadd.f32 %v3828_v30, %v921_v11  ;;  %v927_v21 = vand.u32 2147483647, %v3753_v42  ;;  %v945_v26 = vor.u32 1.1754944e-38, %v944_v63  ;;  %vm925_vm5 = vmor %vm923_vm3, %vm924_vm15  ;;  %v3952_v56 = vmul.f32 %v5196_v59, %v886_v57  ;;  %v5209_v11 = vld [vmem:[#allocation21_spill] sm:$0xff]  ;;  %v5210_v38 = vld [vmem:[#allocation18_spill] sm:$0xff] }
 0x182   : > { %1130 = vperm.xlu0 %2444, %v3923_v43   ;;  %v941_v49 = vsel %vm3937_vm1, %v3743_v37, %v937_v6  ;;  %vm943_vm9 = vcmp.eq.f32.partialorder %v942_v29, 8.507059e+37  ;;  %v930_v18 = vor.u32 1.1754944e-38, %v929_v60  ;;  %v966_v4 = vmul.f32 %v3898_v14, %v965_v44  ;;  %v5212_v60 = vld [vmem:[#allocation22_spill] sm:$0xff] }
 0x183   : > { %1110 = vperm.xlu1 %2442, %v3943_v61   ;;  %v926_v12 = vsel %vm925_vm5, %v3828_v30, %v922_v1  ;;  %vm928_vm0 = vcmp.eq.f32.partialorder %v927_v21, 8.507059e+37  ;;  %v946_v42 = vsel %vm943_vm9, %v945_v26, %v941_v49  ;;  %vm968_vm7 = vweird.f32 %v3837_v31  ;;  %v5198_v30 = vld [vmem:[#allocation8_spill] sm:$0xff]  ;;  %v4070_v59 = vld [vmem:[%s2838_s27 + $0x48] sm:$0xff]  ;;  %v4076_v49 = vld [vmem:[%s2838_s27] sm:$0xff] }
 0x184   : > { %vm969_vm13 = vweird.f32 %v3898_v14  ;;  %v974_v63 = vand.u32 2147483648, %v3837_v31  ;;  %v931_v24 = vsel %vm928_vm0, %v930_v18, %v926_v12  ;;  %v3964_v51 = vmul.f32 %v5197_v40, %v946_v42  ;;  %v4087_v12 = vld [vmem:[%s5102_s1] sm:$0xf] }
 0x185   : > { %1105 = vperm.xlu2 %2443, %v3952_v56   ;;  %v967_v37 = vadd.f32 %v3898_v14, %v966_v4  ;;  %v972_v27 = vand.u32 2147483647, %v3837_v31  ;;  %v2759_v23 = vmov 1   ;;  %vm970_vm11 = vmor %vm968_vm7, %vm969_vm13  ;;  %v3970_v36 = vmul.f32 %v5198_v30, %v931_v24  ;;  %v5200_v31 = vld [vmem:[#allocation9_spill] sm:$0xff]  ;;  %v4096_v24 = vld [vmem:[%s2838_s27 + $0x18] sm:$0xff] }
 0x186   : > { %v975_v48 = vor.u32 1.1754944e-38, %v974_v63  ;;  %v4090_v42 = vld [vmem:[%s2838_s27 + $0x60] sm:$0xff] }
 0x187   : > { %v3973_v52 = vpop.permute.xlu2 %985  ;;  %v971_v46 = vsel %vm970_vm11, %v3898_v14, %v967_v37  ;;  %vm973_vm14 = vcmp.eq.f32.partialorder %v972_v27, 8.507059e+37  ;;  %v5205_v14 = vld [vmem:[#allocation11_spill] sm:$0xff]  ;;  %v4105_v37 = vperm.slane %v4087_v12, 0 }
 0x188   : > { %v976_v28 = vsel %vm973_vm14, %v975_v48, %v971_v46  ;;  %v4108_v27 = vld [vmem:[%s2838_s27 + $0x10] sm:$0xff]  ;;  %v4117_v48 = vld [vmem:[%s2838_s27 + $0x78] sm:$0xff]  ;;  %v4121_v46 = vld [vmem:[%s2838_s27 + $0x28] sm:$0xff] }
 0x189   : > { %v3978_v9 = vmul.f32 %v5200_v31, %v976_v28 }
 0x18a   : > { %2446 = vset.pattern.permute.xlu0 %v2759_v23 }
 0x18b   : > { %1125 = vperm.xlu1 %2442, %v3964_v51   ;;  %1176 = vperm.xlu0 %2446, %v5199_v54  }
 0x18d   : > { %1120 = vperm.xlu2 %2443, %v3970_v36  }
 0x18f   : > { %v3983_v13 = vpop.permute.xlu2 %995 }
 0x193   : > { %2445 = vset.pattern.permute.xlu1 %v2759_v23  ;;  %1196 = vperm.xlu0 %2446, %v5201_v32  }
 0x194   : > { %1172 = vperm.xlu1 %2445, %v5202_v50   ;;  %v4130_v50 = vld [vmem:[%s2838_s27 + $0x20] sm:$0xff] }
 0x195   : > { %1135 = vperm.xlu2 %2443, %v3978_v9   ;;  %v3997_v0 = vpop.permute.xlu0 %990 }
 0x196   : > { %v3991_v8 = vpop.permute.xlu1 %980  ;;  %v1141_v30 = vmul.f32 %v4105_v37, %v3997_v0 }
 0x197   : > { %v3988_v53 = vpop.permute.xlu2 %1005 }
 0x19b   : > { %1208 = vperm.xlu0 %2446, %v5203_v39  }
 0x19c   : > { %1184 = vperm.xlu1 %2445, %v5204_v20  }
 0x19d   : > { %2447 = vset.pattern.permute.xlu2 %v2759_v23 }
 0x19e   : > { %1180 = vperm.xlu2 %2447, %v5205_v14  }
 0x1a0   : > { %v3995_v35 = vpop.permute.xlu2 %1015 }
 0x1a3   : > { %1220 = vperm.xlu0 %2446, %v5206_v17  }
 0x1a4   : > { %1192 = vperm.xlu1 %2445, %v5207_v34  }
 0x1a6   : > { %1188 = vperm.xlu2 %2447, %v5208_v22   ;;  %v4141_v22 = vld [vmem:[%s2838_s27 + $0x90] sm:$0xff] }
 0x1a7   : > { %v4000_v3 = vpop.permute.xlu1 %1000 }
 0x1a8   : > { %v1143_v14 = vmul.f32 %v4105_v37, %v4000_v3 }
 0x1ab   : > { %1232 = vperm.xlu0 %2446, %v5209_v11   ;;  %v4007_v29 = vpop.permute.xlu2 %1030 }
 0x1ac   : > { %1204 = vperm.xlu1 %2445, %v5210_v38  }
 0x1ae   : > { %1200 = vperm.xlu2 %2447, %v5211_v5   ;;  %v4004_v6 = vpop.permute.xlu0 %1025  ;;  %v1139_v5 = vmul.f32 %v4105_v37, %v3991_v8  ;;  %v4168_v8 = vld [vmem:[%s2838_s27 + $0xa8] sm:$0xff] }
 0x1af   : > { %v4010_v57 = vpop.permute.xlu1 %1010 }
 0x1b0   : > { %v1145_v11 = vmul.f32 %v4105_v37, %v4010_v57 }
 0x1b3   : > { %1244 = vperm.xlu0 %2446, %v3656_v16  }
 0x1b4   : > { %1216 = vperm.xlu1 %2445, %v5212_v60   ;;  %v4154_v60 = vld [vmem:[%s2838_s27 + $0x38] sm:$0xff] }
 0x1b6   : > { %1212 = vperm.xlu2 %2447, %v5213_v55   ;;  %v4015_v44 = vpop.permute.xlu0 %1040 }
 0x1b7   : > { %v4020_v1 = vpop.permute.xlu1 %1020 }
 0x1bb   : > { %1256 = vperm.xlu0 %2446, %v3734_v25   ;;  %v4017_v10 = vpop.permute.xlu2 %1045 }
 0x1bc   : > { %1228 = vperm.xlu1 %2445, %v3688_v41  }
 0x1be   : > { %1224 = vperm.xlu2 %2447, %v3700_v47   ;;  %v4025_v16 = vpop.permute.xlu0 %1055 }
 0x1c3   : > { %1268 = vperm.xlu0 %2446, %v3825_v58   ;;  %v4029_v25 = vpop.permute.xlu1 %1035 }
 0x1c4   : > { %1240 = vperm.xlu1 %2445, %v3746_v45  }
 0x1c6   : > { %1236 = vperm.xlu2 %2447, %v3780_v62   ;;  %v4027_v21 = vpop.permute.xlu2 %1060 }
 0x1cb   : > { %1280 = vperm.xlu0 %2446, %v3871_v33   ;;  %v4051_v33 = vld [vmem:[%s2838_s27 + $0x8] sm:$0xff] }
 0x1cc   : > { %1252 = vperm.xlu1 %2445, %v3832_v19   ;;  %v2760_v19 = vmov 2  }
 0x1ce   : > { %1248 = vperm.xlu2 %2447, %v3845_v2   ;;  %v4036_v47 = vpop.permute.xlu0 %1070 }
 0x1cf   : > { %v4034_v41 = vpop.permute.xlu2 %1075 }
 0x1d1   : > { %v4039_v45 = vpop.permute.xlu1 %1050 }
 0x1d3   : > { %1292 = vperm.xlu0 %2446, %v3923_v43  }
 0x1d4   : > { %1264 = vperm.xlu1 %2445, %v3887_v7  }
 0x1d6   : > { %1260 = vperm.xlu2 %2447, %v3909_v15   ;;  %v4059_v15 = vld [vmem:[%s2838_s27 + $0x30] sm:$0xff] }
 0x1d7   : > { %v4043_v62 = vpop.permute.xlu2 %1090 }
 0x1d9   : > { %v4045_v58 = vpop.permute.xlu0 %1085 }
 0x1da   : > { %v4047_v2 = vpop.permute.xlu1 %1065 }
 0x1db   : > { %2449 = vset.pattern.permute.xlu0 %v2760_v19 }
 0x1dc   : > { %1276 = vperm.xlu1 %2445, %v3943_v61   ;;  %1371 = vperm.xlu0 %2449, %v4051_v33  }
 0x1de   : > { %1272 = vperm.xlu2 %2447, %v3952_v56  }
 0x1df   : > { %v4055_v7 = vpop.permute.xlu2 %1105 }
 0x1e4   : > { %1288 = vperm.xlu1 %2445, %v3964_v51   ;;  %1396 = vperm.xlu0 %2449, %v4059_v15   ;;  %v4062_v43 = vpop.permute.xlu0 %1100  ;;  %v4102_v51 = vperm.slane %v4087_v12, 1 }
 0x1e5   : > { %v4064_v26 = vpop.permute.xlu1 %1080 }
 0x1e6   : > { %1284 = vperm.xlu2 %2447, %v3970_v36  }
 0x1e7   : > { %v4067_v61 = vpop.permute.xlu2 %1120 }
 0x1ec   : > { %2448 = vset.pattern.permute.xlu1 %v2760_v19  ;;  %1411 = vperm.xlu0 %2449, %v4070_v59   ;;  %v4073_v56 = vpop.permute.xlu0 %1115 }
 0x1ed   : > { %1366 = vperm.xlu1 %2448, %v4076_v49   ;;  %v4079_v18 = vpop.permute.xlu1 %1095 }
 0x1ee   : > { %1296 = vperm.xlu2 %2447, %v3978_v9   ;;  %v1140_v9 = vmul.f32 %v4105_v37, %v3973_v52  ;;  %v4145_v52 = vld [vmem:[%s2838_s27 + $0x40] sm:$0xff] }
 0x1ef   : > { %v4082_v4 = vpop.permute.xlu2 %1135 }
 0x1f4   : > { %1426 = vperm.xlu0 %2449, %v4090_v42   ;;  %v4093_v63 = vpop.permute.xlu0 %1130 }
 0x1f5   : > { %1381 = vperm.xlu1 %2448, %v4096_v24   ;;  %v4099_v40 = vpop.permute.xlu1 %1110 }
 0x1f6   : > { %2450 = vset.pattern.permute.xlu2 %v2760_v19 }
 0x1f7   : > { %1376 = vperm.xlu2 %2450, %v4108_v27  }
 0x1f8   : > { %v1181_v23 = vpop.permute.xlu2 %1180 }
 0x1f9   : > { %v1302_v36 = vmul.f32 %v4102_v51, %v1181_v23 }
 0x1fb   : > { %v4114_v54 = vadd.f32 %v1302_v36, %v1141_v30  ;;  %v1146_v30 = vmul.f32 %v4105_v37, %v3995_v35  ;;  %v1148_v35 = vmul.f32 %v4105_v37, %v4004_v6 }
 0x1fc   : > { %1441 = vperm.xlu0 %2449, %v4117_v48  }
 0x1fd   : > { %1391 = vperm.xlu1 %2448, %v4121_v46   ;;  %v4124_v28 = vpop.permute.xlu1 %1125  ;;  %v1177_v31 = vpop.permute.xlu0 %1176 }
 0x1fe   : > { %v1301_v32 = vmul.f32 %v4102_v51, %v1177_v31 }
 0x1ff   : > { %1386 = vperm.xlu2 %2450, %v4130_v50  }
 0x200   : > { %v1189_v39 = vpop.permute.xlu2 %1188  ;;  %v4133_v20 = vadd.f32 %v1301_v32, %v1140_v9  ;;  %v4172_v9 = vld [vmem:[%s2838_s27 + $0x58] sm:$0xff] }
 0x201   : > { %v1304_v17 = vmul.f32 %v4102_v51, %v1189_v39 }
 0x203   : > { %v4138_v34 = vadd.f32 %v1304_v17, %v1143_v14  ;;  %v1142_v17 = vmul.f32 %v4105_v37, %v3983_v13  ;;  %v4195_v13 = vld [vmem:[%s2838_s27 + $0xc0] sm:$0xff] }
 0x204   : > { %1456 = vperm.xlu0 %2449, %v4141_v22  }
 0x205   : > { %1406 = vperm.xlu1 %2448, %v4145_v52   ;;  %v1197_v0 = vpop.permute.xlu0 %1196 }
 0x206   : > { %v1173_v38 = vpop.permute.xlu1 %1172  ;;  %v1306_v3 = vmul.f32 %v4102_v51, %v1197_v0  ;;  %v4181_v0 = vld [vmem:[%s2838_s27 + $0x50] sm:$0xff] }
 0x207   : > { %1401 = vperm.xlu2 %2450, %v4154_v60   ;;  %v1300_v55 = vmul.f32 %v4102_v51, %v1173_v38 }
 0x208   : > { %v1201_v19 = vpop.permute.xlu2 %1200  ;;  %v4158_v23 = vadd.f32 %v1306_v3, %v1145_v11 }
 0x209   : > { %v4162_v57 = vadd.f32 %v1300_v55, %v1139_v5  ;;  %v1307_v36 = vmul.f32 %v4102_v51, %v1201_v19  ;;  %v1149_v5 = vmul.f32 %v4105_v37, %v4007_v29  ;;  %v1151_v29 = vmul.f32 %v4105_v37, %v4015_v44 }
 0x20b   : > { %v4165_v31 = vadd.f32 %v1307_v36, %v1146_v30  ;;  %v4199_v30 = vld [vmem:[%s2838_s27 + $0x70] sm:$0xff] }
 0x20c   : > { %1471 = vperm.xlu0 %2449, %v4168_v8  }
 0x20d   : > { %1421 = vperm.xlu1 %2448, %v4172_v9   ;;  %v1209_v32 = vpop.permute.xlu0 %1208 }
 0x20e   : > { %v1185_v39 = vpop.permute.xlu1 %1184  ;;  %v1309_v14 = vmul.f32 %v4102_v51, %v1209_v32 }
 0x20f   : > { %1416 = vperm.xlu2 %2450, %v4181_v0   ;;  %v1303_v11 = vmul.f32 %v4102_v51, %v1185_v39  ;;  %v1144_v39 = vmul.f32 %v4105_v37, %v3988_v53  ;;  %v4222_v53 = vld [vmem:[%s2838_s27 + $0xd8] sm:$0xff] }
 0x210   : > { %v1213_v38 = vpop.permute.xlu2 %1212  ;;  %v4185_v3 = vadd.f32 %v1309_v14, %v1148_v35  ;;  %v4208_v14 = vld [vmem:[%s2838_s27 + $0x68] sm:$0xff] }
 0x211   : > { %v4189_v6 = vadd.f32 %v1303_v11, %v1142_v17  ;;  %v1310_v55 = vmul.f32 %v4102_v51, %v1213_v38 }
 0x213   : > { %5214 = vst [vmem:[#allocation5_spill] sm:$0xff] %v4189_v6  ;;  %v4192_v19 = vadd.f32 %v1310_v55, %v1149_v5  ;;  %v1152_v5 = vmul.f32 %v4105_v37, %v4017_v10  ;;  %v1154_v10 = vmul.f32 %v4105_v37, %v4025_v16  ;;  %v4253_v6 = vld [vmem:[%s2838_s27 + $0xa0] sm:$0xff] }
 0x214   : > { %1486 = vperm.xlu0 %2449, %v4195_v13  }
 0x215   : > { %5215 = vst [vmem:[#allocation6_spill] sm:$0xff] %v4192_v19  ;;  %1436 = vperm.xlu1 %2448, %v4199_v30   ;;  %v1221_v36 = vpop.permute.xlu0 %1220  ;;  %v4226_v19 = vld [vmem:[%s2838_s27 + $0x88] sm:$0xff] }
 0x216   : > { %v1193_v32 = vpop.permute.xlu1 %1192  ;;  %v1312_v35 = vmul.f32 %v4102_v51, %v1221_v36 }
 0x217   : > { %1431 = vperm.xlu2 %2450, %v4208_v14   ;;  %v1305_v17 = vmul.f32 %v4102_v51, %v1193_v32 }
 0x218   : > { %v1225_v11 = vpop.permute.xlu2 %1224  ;;  %v4212_v38 = vadd.f32 %v1312_v35, %v1151_v29 }
 0x219   : > { %v4216_v44 = vadd.f32 %v1305_v17, %v1144_v39  ;;  %v1313_v55 = vmul.f32 %v4102_v51, %v1225_v11  ;;  %v1147_v39 = vmul.f32 %v4105_v37, %v4020_v1  ;;  %v4235_v17 = vld [vmem:[%s2838_s27 + $0x80] sm:$0xff]  ;;  %v4249_v1 = vld [vmem:[%s2838_s27 + $0xf0] sm:$0xff] }
 0x21b   : > { %5216 = vst [vmem:[#allocation7_spill] sm:$0xff] %v4216_v44  ;;  %v4219_v36 = vadd.f32 %v1313_v55, %v1152_v5 }
 0x21c   : > { %1501 = vperm.xlu0 %2449, %v4222_v53  }
 0x21d   : > { %5217 = vst [vmem:[#allocation8_spill] sm:$0xff] %v4219_v36  ;;  %1451 = vperm.xlu1 %2448, %v4226_v19   ;;  %v1233_v29 = vpop.permute.xlu0 %1232  ;;  %v1155_v36 = vmul.f32 %v4105_v37, %v4027_v21 }
 0x21e   : > { %v1205_v32 = vpop.permute.xlu1 %1204  ;;  %v1315_v35 = vmul.f32 %v4102_v51, %v1233_v29 }
 0x21f   : > { %1446 = vperm.xlu2 %2450, %v4235_v17   ;;  %v1308_v11 = vmul.f32 %v4102_v51, %v1205_v32 }
 0x220   : > { %v1237_v5 = vpop.permute.xlu2 %1236  ;;  %v4239_v55 = vadd.f32 %v1315_v35, %v1154_v10  ;;  %v1157_v10 = vmul.f32 %v4105_v37, %v4036_v47 }
 0x221   : > { %v4243_v16 = vadd.f32 %v1308_v11, %v1147_v39  ;;  %v1316_v29 = vmul.f32 %v4102_v51, %v1237_v5  ;;  %v4262_v39 = vld [vmem:[%s2838_s27 + $0x98] sm:$0xff] }
 0x222   : > { %5218 = vst [vmem:[#allocation12_spill] sm:$0xff] %v4239_v55  ;;  %v4277_v55 = vld [vmem:[%s2838_s27 + $0xb8] sm:$0xff] }
 0x223   : > { %5219 = vst [vmem:[#allocation9_spill] sm:$0xff] %v4243_v16  ;;  %v4246_v44 = vadd.f32 %v1316_v29, %v1155_v36  ;;  %v1150_v36 = vmul.f32 %v4105_v37, %v4029_v25  ;;  %v5123_v25 = vmov 3  }
 0x224   : > { %1516 = vperm.xlu0 %2449, %v4249_v1  }
 0x225   : > { %5220 = vst [vmem:[#allocation16_spill] sm:$0xff] %v4246_v44  ;;  %1466 = vperm.xlu1 %2448, %v4253_v6   ;;  %v1245_v32 = vpop.permute.xlu0 %1244  ;;  %v1158_v44 = vmul.f32 %v4105_v37, %v4034_v41  ;;  %v1160_v41 = vmul.f32 %v4105_v37, %v4045_v58 }
 0x226   : > { %v1217_v21 = vpop.permute.xlu1 %1216  ;;  %v1318_v35 = vmul.f32 %v4102_v51, %v1245_v32 }
 0x227   : > { %1461 = vperm.xlu2 %2450, %v4262_v39   ;;  %v1311_v11 = vmul.f32 %v4102_v51, %v1217_v21 }
 0x228   : > { %v1249_v5 = vpop.permute.xlu2 %1248  ;;  %v4266_v29 = vadd.f32 %v1318_v35, %v1157_v10 }
 0x229   : > { %v4270_v47 = vadd.f32 %v1311_v11, %v1150_v36  ;;  %v1319_v32 = vmul.f32 %v4102_v51, %v1249_v5  ;;  %v4287_v36 = vld [vmem:[%s2838_s27 + $0xb0] sm:$0xff] }
 0x22b   : > { %v4273_v16 = vadd.f32 %v1319_v32, %v1158_v44  ;;  %v1153_v44 = vmul.f32 %v4105_v37, %v4039_v45  ;;  %v4301_v45 = vld [vmem:[%s2838_s27 + $0xd0] sm:$0xff] }
 0x22c   : > { %2452 = vset.pattern.permute.xlu0 %v5123_v25 }
 0x22d   : > { %1481 = vperm.xlu1 %2448, %v4277_v55   ;;  %1594 = vperm.xlu0 %2452, %v4051_v33   ;;  %v1257_v10 = vpop.permute.xlu0 %1256  ;;  %v1161_v33 = vmul.f32 %v4105_v37, %v4043_v62 }
 0x22e   : > { %v1229_v21 = vpop.permute.xlu1 %1228  ;;  %v1321_v35 = vmul.f32 %v4102_v51, %v1257_v10 }
 0x22f   : > { %1476 = vperm.xlu2 %2450, %v4287_v36   ;;  %v1314_v11 = vmul.f32 %v4102_v51, %v1229_v21 }
 0x230   : > { %v1261_v5 = vpop.permute.xlu2 %1260  ;;  %v4291_v32 = vadd.f32 %v1321_v35, %v1160_v41  ;;  %v1163_v41 = vmul.f32 %v4105_v37, %v4062_v43 }
 0x231   : > { %v4295_v58 = vadd.f32 %v1314_v11, %v1153_v44  ;;  %v1322_v10 = vmul.f32 %v4102_v51, %v1261_v5  ;;  %v1156_v44 = vmul.f32 %v4105_v37, %v4047_v2  ;;  %v4311_v11 = vld [vmem:[%s2838_s27 + $0xc8] sm:$0xff] }
 0x232   : > { %v4325_v2 = vld [vmem:[%s2838_s27 + $0xe8] sm:$0xff] }
 0x233   : > { %5221 = vst [vmem:[#allocation10_spill] sm:$0xff] %v4295_v58  ;;  %v4298_v25 = vadd.f32 %v1322_v10, %v1161_v33 }
 0x235   : > { %5222 = vst [vmem:[#allocation17_spill] sm:$0xff] %v4298_v25  ;;  %1496 = vperm.xlu1 %2448, %v4301_v45   ;;  %1614 = vperm.xlu0 %2452, %v4059_v15   ;;  %v1269_v21 = vpop.permute.xlu0 %1268  ;;  %v1164_v15 = vmul.f32 %v4105_v37, %v4055_v7  ;;  %v1159_v7 = vmul.f32 %v4105_v37, %v4064_v26  ;;  %v5229_v26 = vmov 3  }
 0x236   : > { %v1241_v35 = vpop.permute.xlu1 %1240  ;;  %v1324_v62 = vmul.f32 %v4102_v51, %v1269_v21 }
 0x237   : > { %1491 = vperm.xlu2 %2450, %v4311_v11   ;;  %v1317_v5 = vmul.f32 %v4102_v51, %v1241_v35 }
 0x238   : > { %v1273_v33 = vpop.permute.xlu2 %1272  ;;  %v4315_v10 = vadd.f32 %v1324_v62, %v1163_v41  ;;  %v1166_v41 = vmul.f32 %v4105_v37, %v4073_v56 }
 0x239   : > { %v4319_v43 = vadd.f32 %v1317_v5, %v1156_v44  ;;  %v1325_v21 = vmul.f32 %v4102_v51, %v1273_v33  ;;  %v4335_v44 = vld [vmem:[%s2838_s27 + $0xe0] sm:$0xff] }
 0x23a   : > { %5223 = vst [vmem:[#allocation13_spill] sm:$0xff] %v4315_v10 }
 0x23b   : > { %5224 = vst [vmem:[#allocation11_spill] sm:$0xff] %v4319_v43  ;;  %v4322_v25 = vadd.f32 %v1325_v21, %v1164_v15 }
 0x23d   : > { %5225 = vst [vmem:[#allocation19_spill] sm:$0xff] %v4322_v25  ;;  %1511 = vperm.xlu1 %2448, %v4325_v2   ;;  %1626 = vperm.xlu0 %2452, %v4070_v59   ;;  %v1281_v58 = vpop.permute.xlu0 %1280  ;;  %v1167_v59 = vmul.f32 %v4105_v37, %v4067_v61  ;;  %v1162_v61 = vmul.f32 %v4105_v37, %v4079_v18 }
 0x23e   : > { %v1253_v35 = vpop.permute.xlu1 %1252  ;;  %v1327_v62 = vmul.f32 %v4102_v51, %v1281_v58 }
 0x23f   : > { %1506 = vperm.xlu2 %2450, %v4335_v44   ;;  %v1320_v5 = vmul.f32 %v4102_v51, %v1253_v35  ;;  %v1169_v35 = vmul.f32 %v4105_v37, %v4093_v63  ;;  %v1170_v63 = vmul.f32 %v4105_v37, %v4082_v4 }
 0x240   : > { %v1285_v33 = vpop.permute.xlu2 %1284  ;;  %v4339_v15 = vadd.f32 %v1327_v62, %v1166_v41 }
 0x241   : > { %v4343_v56 = vadd.f32 %v1320_v5, %v1159_v7  ;;  %v1328_v58 = vmul.f32 %v4102_v51, %v1285_v33  ;;  %v4357_v7 = vld [vmem:[%s2838_s27 + $0xf8] sm:$0xff] }
 0x242   : > { %5226 = vst [vmem:[#allocation15_spill] sm:$0xff] %v4339_v15 }
 0x243   : > { %5227 = vst [vmem:[#allocation14_spill] sm:$0xff] %v4343_v56  ;;  %v4346_v21 = vadd.f32 %v1328_v58, %v1167_v59 }
 0x245   : > { %5228 = vst [vmem:[#allocation21_spill] sm:$0xff] %v4346_v21  ;;  %2451 = vset.pattern.permute.xlu1 %v5229_v26  ;;  %1638 = vperm.xlu0 %2452, %v4090_v42   ;;  %v1293_v25 = vpop.permute.xlu0 %1292 }
 0x246   : > { %1590 = vperm.xlu1 %2451, %v4076_v49   ;;  %v1265_v41 = vpop.permute.xlu1 %1264  ;;  %v1330_v62 = vmul.f32 %v4102_v51, %v1293_v25 }
 0x247   : > { %1521 = vperm.xlu2 %2450, %v4357_v7   ;;  %v1323_v5 = vmul.f32 %v4102_v51, %v1265_v41  ;;  %v1165_v41 = vmul.f32 %v4105_v37, %v4099_v40 }
 0x248   : > { %v1297_v33 = vpop.permute.xlu2 %1296  ;;  %v4361_v42 = vadd.f32 %v1330_v62, %v1169_v35 }
 0x249   : > { %v4365_v59 = vadd.f32 %v1323_v5, %v1162_v61  ;;  %v1331_v49 = vmul.f32 %v4102_v51, %v1297_v33  ;;  %v1168_v61 = vmul.f32 %v4105_v37, %v4124_v28 }
 0x24a   : > { %5230 = vst [vmem:[#allocation18_spill] sm:$0xff] %v4361_v42 }
 0x24b   : > { %5231 = vst [vmem:[#allocation20_spill] sm:$0xff] %v4365_v59  ;;  %v4368_v25 = vadd.f32 %v1331_v49, %v1170_v63  ;;  %v4435_v63 = vperm.slane %v4087_v12, 3 }
 0x24d   : > { %5232 = vst [vmem:[#allocation22_spill] sm:$0xff] %v4368_v25  ;;  %1650 = vperm.xlu0 %2452, %v4117_v48  }
 0x24e   : > { %1602 = vperm.xlu1 %2451, %v4096_v24   ;;  %v1277_v18 = vpop.permute.xlu1 %1276  ;;  %v1372_v58 = vpop.permute.xlu0 %1371 }
 0x24f   : > { %2453 = vset.pattern.permute.xlu2 %v5229_v26  ;;  %v1326_v35 = vmul.f32 %v4102_v51, %v1277_v18 }
 0x250   : > { %1598 = vperm.xlu2 %2453, %v4108_v27  }
 0x251   : > { %v4377_v4 = vadd.f32 %v1326_v35, %v1165_v41  ;;  %v1377_v62 = vpop.permute.xlu2 %1376 }
 0x253   : > { %5233 = vst [vmem:[#allocation23_spill] sm:$0xff] %v4377_v4 }
 0x255   : > { %1662 = vperm.xlu0 %2452, %v4141_v22  }
 0x256   : > { %1610 = vperm.xlu1 %2451, %v4121_v46   ;;  %v1289_v48 = vpop.permute.xlu1 %1288  ;;  %v1397_v24 = vpop.permute.xlu0 %1396 }
 0x257   : > { %v1329_v40 = vmul.f32 %v4102_v51, %v1289_v48 }
 0x258   : > { %1606 = vperm.xlu2 %2453, %v4130_v50  }
 0x259   : > { %v4385_v26 = vadd.f32 %v1329_v40, %v1168_v61  ;;  %v1387_v5 = vpop.permute.xlu2 %1386 }
 0x25b   : > { %5234 = vst [vmem:[#allocation24_spill] sm:$0xff] %v4385_v26 }
 0x25d   : > { %1674 = vperm.xlu0 %2452, %v4168_v8  }
 0x25e   : > { %1622 = vperm.xlu1 %2451, %v4145_v52   ;;  %v1412_v27 = vpop.permute.xlu0 %1411 }
 0x25f   : > { %v1367_v22 = vpop.permute.xlu1 %1366 }
 0x260   : > { %1618 = vperm.xlu2 %2453, %v4154_v60  }
 0x261   : > { %v1402_v46 = vpop.permute.xlu2 %1401 }
 0x265   : > { %1686 = vperm.xlu0 %2452, %v4195_v13  }
 0x266   : > { %1634 = vperm.xlu1 %2451, %v4172_v9   ;;  %v1427_v37 = vpop.permute.xlu0 %1426 }
 0x267   : > { %v1382_v51 = vpop.permute.xlu1 %1381 }
 0x268   : > { %1630 = vperm.xlu2 %2453, %v4181_v0  }
 0x269   : > { %v1417_v28 = vpop.permute.xlu2 %1416 }
 0x26d   : > { %1698 = vperm.xlu0 %2452, %v4222_v53  }
 0x26e   : > { %1646 = vperm.xlu1 %2451, %v4199_v30   ;;  %v1442_v50 = vpop.permute.xlu0 %1441 }
 0x26f   : > { %v1392_v52 = vpop.permute.xlu1 %1391 }
 0x270   : > { %1642 = vperm.xlu2 %2453, %v4208_v14  }
 0x271   : > { %v1432_v8 = vpop.permute.xlu2 %1431 }
 0x275   : > { %1710 = vperm.xlu0 %2452, %v4249_v1  }
 0x276   : > { %1658 = vperm.xlu1 %2451, %v4226_v19   ;;  %v1457_v60 = vpop.permute.xlu0 %1456 }
 0x277   : > { %v1407_v9 = vpop.permute.xlu1 %1406 }
 0x278   : > { %1654 = vperm.xlu2 %2453, %v4235_v17  }
 0x279   : > { %v1447_v13 = vpop.permute.xlu2 %1446 }
 0x27e   : > { %1670 = vperm.xlu1 %2451, %v4253_v6   ;;  %v4400_v0 = vpop.permute.xlu0 %1471 }
 0x27f   : > { %v4402_v53 = vpop.permute.xlu1 %1421 }
 0x280   : > { %1666 = vperm.xlu2 %2453, %v4262_v39  }
 0x281   : > { %v4405_v30 = vpop.permute.xlu2 %1461 }
 0x286   : > { %1682 = vperm.xlu1 %2451, %v4277_v55   ;;  %v4408_v14 = vpop.permute.xlu0 %1486 }
 0x287   : > { %v4410_v19 = vpop.permute.xlu1 %1436 }
 0x288   : > { %1678 = vperm.xlu2 %2453, %v4287_v36  }
 0x289   : > { %v4413_v17 = vpop.permute.xlu2 %1476 }
 0x28e   : > { %1694 = vperm.xlu1 %2451, %v4301_v45   ;;  %v4416_v6 = vpop.permute.xlu0 %1501  ;;  %v4432_v45 = vperm.slane %v4087_v12, 2 }
 0x28f   : > { %v4418_v1 = vpop.permute.xlu1 %1451 }
 0x290   : > { %1690 = vperm.xlu2 %2453, %v4311_v11   ;;  %v1526_v11 = vsub.f32 %v1372_v58, %v4432_v45  ;;  %v1531_v61 = vsub.f32 %v1397_v24, %v4432_v45  ;;  %v1529_v12 = vsub.f32 %v1387_v5, %v4432_v45  ;;  %v1525_v58 = vsub.f32 %v1367_v22, %v4432_v45 }
 0x291   : > { %v4421_v39 = vpop.permute.xlu2 %1491  ;;  %v1532_v26 = vsub.f32 %v1402_v46, %v4432_v45  ;;  %v1537_v25 = vsub.f32 %v1427_v37, %v4432_v45  ;;  %v1535_v24 = vsub.f32 %v1417_v28, %v4432_v45  ;;  %v1540_v5 = vsub.f32 %v1442_v50, %v4432_v45 }
 0x292   : > { %v1558_v35 = vmul.f32 %v1526_v11, %v1526_v11  ;;  %v1530_v11 = vsub.f32 %v1392_v52, %v4432_v45  ;;  %v1538_v46 = vsub.f32 %v1432_v8, %v4432_v45 }
 0x293   : > { %v4468_v28 = vmul.f32 %v1532_v26, %v1532_v26  ;;  %v4472_v50 = vmul.f32 %v1537_v25, %v1537_v25 }
 0x294   : > { %v4482_v26 = vmul.f32 %v1538_v46, %v1538_v46  ;;  %v1544_v46 = vsub.f32 %v4405_v30, %v4432_v45  ;;  %v1542_v30 = vsub.f32 %v4418_v1, %v4432_v45 }
 0x296   : > { %1706 = vperm.xlu1 %2451, %v4325_v2   ;;  %v4424_v55 = vpop.permute.xlu0 %1516 }
 0x297   : > { %v4426_v33 = vpop.permute.xlu1 %1466  ;;  %v1555_v1 = vsub.f32 %v4424_v55, %v4432_v45 }
 0x298   : > { %1702 = vperm.xlu2 %2453, %v4335_v44   ;;  %v1527_v44 = vsub.f32 %v1377_v62, %v4432_v45  ;;  %v1563_v62 = vmul.f32 %v1531_v61, %v1531_v61  ;;  %v1541_v61 = vsub.f32 %v1447_v13, %v4432_v45  ;;  %v1536_v13 = vsub.f32 %v4402_v53, %v4432_v45 }
 0x299   : > { %v4429_v36 = vpop.permute.xlu2 %1506  ;;  %v1547_v53 = vsub.f32 %v4413_v17, %v4432_v45  ;;  %v1545_v55 = vsub.f32 %v4426_v33, %v4432_v45 }
 0x29a   : > { %v1559_v4 = vmul.f32 %v1527_v44, %v1527_v44  ;;  %v4464_v44 = vmul.f32 %v1529_v12, %v1529_v12 }
 0x29f   : > { %v4438_v49 = vpop.permute.xlu1 %1481  ;;  %v1595_v18 = vpop.permute.xlu0 %1594 }
 0x2a0   : > { %1714 = vperm.xlu2 %2453, %v4357_v7   ;;  %v1719_v2 = vsub.f32 %v1595_v18, %v4435_v63  ;;  %v1534_v7 = vsub.f32 %v1412_v27, %v4432_v45  ;;  %v1528_v18 = vsub.f32 %v1382_v51, %v4432_v45  ;;  %v1533_v27 = vsub.f32 %v1407_v9, %v4432_v45 }
 0x2a1   : > { %v4442_v41 = vpop.permute.xlu2 %1521  ;;  %v1543_v51 = vsub.f32 %v1457_v60, %v4432_v45  ;;  %v4475_v9 = vmul.f32 %v1535_v24, %v1535_v24  ;;  %v4477_v60 = vmul.f32 %v1530_v11, %v1530_v11  ;;  %v1546_v24 = vsub.f32 %v4400_v0, %v4432_v45 }
 0x2a2   : > { %v1751_v48 = vmul.f32 %v1719_v2, %v1719_v2  ;;  %v1566_v52 = vmul.f32 %v1534_v7, %v1534_v7  ;;  %v4484_v7 = vmul.f32 %v1533_v27, %v1533_v27  ;;  %v1549_v27 = vsub.f32 %v4408_v14, %v4432_v45 }
 0x2a3   : > { %v1550_v14 = vsub.f32 %v4421_v39, %v4432_v45  ;;  %v4519_v17 = vmul.f32 %v1546_v24, %v1546_v24 }
 0x2a4   : > { %v4446_v40 = vadd.f32 %v1751_v48, %v1558_v35  ;;  %v4466_v35 = vmul.f32 %v1525_v58, %v1525_v58  ;;  %v4470_v48 = vmul.f32 %v1528_v18, %v1528_v18  ;;  %v4486_v18 = vmul.f32 %v1543_v51, %v1543_v51 }
 0x2a6   : > { %2582 = vrsqrt.f32 %v4446_v40  ;;  %vm1833_vm4 = vcmp.eq.f32.partialorder %v4446_v40, inf  ;;  %vm1835_vm6 = vcmp.eq.f32.partialorder %v4446_v40, 0.0 }
 0x2a7   : > { %v4458_v2 = vpop.permute.xlu1 %1496  ;;  %v1615_v22 = vpop.permute.xlu0 %1614 }
 0x2a8   : > { %v1724_v37 = vsub.f32 %v1615_v22, %v4435_v63  ;;  %v4479_v22 = vmul.f32 %v1540_v5, %v1540_v5 }
 0x2aa   : > { %v1599_v8 = vpop.permute.xlu2 %1598  ;;  %v1756_v59 = vmul.f32 %v1724_v37, %v1724_v37  ;;  %v4495_v37 = vmul.f32 %v1541_v61, %v1541_v61 }
 0x2ab   : > { %v1720_v12 = vsub.f32 %v1599_v8, %v4435_v63  ;;  %v1552_v8 = vsub.f32 %v4416_v6, %v4432_v45 }
 0x2ac   : > { %v2583_v58 = vpop.eup %2582  ;;  %v4488_v25 = vadd.f32 %v1756_v59, %v1563_v62  ;;  %v1539_v59 = vsub.f32 %v4410_v19, %v4432_v45 }
 0x2ad   : > { %v1827_v11 = vmul.f32 %v2583_v58, %v4446_v40  ;;  %v1752_v5 = vmul.f32 %v1720_v12, %v1720_v12  ;;  %v4517_v12 = vmul.f32 %v1536_v13, %v1536_v13 }
 0x2ae   : > { %2584 = vrsqrt.f32 %v4488_v25  ;;  %v4528_v6 = vmul.f32 %v1539_v59, %v1539_v59  ;;  %vm1893_vm2 = vcmp.eq.f32.partialorder %v4488_v25, inf  ;;  %vm1895_vm10 = vcmp.eq.f32.partialorder %v4488_v25, 0.0 }
 0x2af   : > { %v1828_v0 = vmul.f32 %v2583_v58, %v1827_v11  ;;  %v4506_v62 = vadd.f32 %v1752_v5, %v1559_v4  ;;  %v4508_v51 = vpop.permute.xlu1 %1511  ;;  %v1627_v61 = vpop.permute.xlu0 %1626  ;;  %v4522_v11 = vmul.f32 %v1544_v46, %v1544_v46  ;;  %v4524_v5 = vmul.f32 %v1549_v27, %v1549_v27 }
 0x2b0   : > { %5235 = vst [vmem:[#allocation25_spill] sm:$0xff] %v4508_v51  ;;  %v1727_v19 = vsub.f32 %v1627_v61, %v4435_v63  ;;  %v4530_v61 = vmul.f32 %v1547_v53, %v1547_v53  ;;  %v4535_v46 = vmul.f32 %v1550_v14, %v1550_v14  ;;  %v4537_v27 = vmul.f32 %v1552_v8, %v1552_v8 }
 0x2b1   : > { %v1829_v4 = vmul.f32 0.5, %v1828_v0  ;;  %2586 = vrsqrt.f32 %v4506_v62  ;;  %v4533_v0 = vmul.f32 %v1542_v30, %v1542_v30  ;;  %v1548_v30 = vsub.f32 %v4438_v49, %v4432_v45 }
 0x2b2   : > { %v1607_v39 = vpop.permute.xlu2 %1606  ;;  %v1759_v21 = vmul.f32 %v1727_v19, %v1727_v19  ;;  %v1836_v8 = vand.u32 2147483648, %v4446_v40  ;;  %vm1845_vm8 = vcmp.eq.f32.partialorder %v4506_v62, inf  ;;  %vm1847_vm12 = vcmp.eq.f32.partialorder %v4506_v62, 0.0 }
 0x2b3   : > { %v1830_v13 = vsub.f32 1.5, %v1829_v4  ;;  %v1722_v24 = vsub.f32 %v1607_v39, %v4435_v63  ;;  %v1553_v4 = vsub.f32 %v4429_v36, %v4432_v45  ;;  %v4547_v39 = vmul.f32 %v1555_v1, %v1555_v1 }
 0x2b4   : > { %v2585_v56 = vpop.eup %2584  ;;  %v4540_v42 = vadd.f32 %v1759_v21, %v1566_v52  ;;  %v1556_v21 = vsub.f32 %v4442_v41, %v4432_v45  ;;  %v4574_v10 = vmul.f32 %v1548_v30, %v1548_v30 }
 0x2b5   : > { %v1831_v59 = vmul.f32 %v2583_v58, %v1830_v13  ;;  %v1887_v53 = vmul.f32 %v2585_v56, %v4488_v25  ;;  %v1754_v19 = vmul.f32 %v1722_v24, %v1722_v24  ;;  %5236 = vst [vmem:[#allocation26_spill] sm:$0xff] %v4547_v39 }
 0x2b6   : > { %2588 = vrsqrt.f32 %v4540_v42  ;;  %vm1929_vm3 = vcmp.eq.f32.partialorder %v4540_v42, inf  ;;  %vm1931_vm1 = vcmp.eq.f32.partialorder %v4540_v42, 0.0 }
 0x2b7   : > { %v2587_v14 = vpop.eup %2586  ;;  %v1832_v33 = vmul.f32 %v1831_v59, %v4446_v40  ;;  %v1888_v52 = vmul.f32 %v2585_v56, %v1887_v53  ;;  %v4558_v58 = vadd.f32 %v1754_v19, %v4464_v44  ;;  %v1639_v36 = vpop.permute.xlu0 %1638  ;;  %v4567_v59 = vmul.f32 %v1545_v55, %v1545_v55 }
 0x2b8   : > { %v1839_v49 = vmul.f32 %v2587_v14, %v4506_v62  ;;  %v1591_v1 = vpop.permute.xlu1 %1590  ;;  %v1730_v13 = vsub.f32 %v1639_v36, %v4435_v63  ;;  %v4569_v44 = vmul.f32 %v1553_v4, %v1553_v4 }
 0x2b9   : > { %v1834_v41 = vsel %vm1833_vm4, %v4446_v40, %v1832_v33  ;;  %v1889_v24 = vmul.f32 0.5, %v1888_v52  ;;  %2590 = vrsqrt.f32 %v4558_v58  ;;  %v1718_v39 = vsub.f32 %v1591_v1, %v4435_v63 }
 0x2ba   : > { %v1837_v53 = vsel %vm1835_vm6, %v1836_v8, %v1834_v41  ;;  %v1840_v19 = vmul.f32 %v2587_v14, %v1839_v49  ;;  %v1619_v51 = vpop.permute.xlu2 %1618  ;;  %v4576_v40 = vmul.f32 %v1556_v21, %v1556_v21  ;;  %v1762_v55 = vmul.f32 %v1730_v13, %v1730_v13 }
 0x2bb   : > { %v2199_v43 = vadd.f32 %v1837_v53, %v4133_v20  ;;  %v1890_v15 = vsub.f32 1.5, %v1889_v24  ;;  %v1725_v36 = vsub.f32 %v1619_v51, %v4435_v63  ;;  %v1750_v20 = vmul.f32 %v1718_v39, %v1718_v39 }
 0x2bc   : > { %v2589_v33 = vpop.eup %2588  ;;  %v1841_v52 = vmul.f32 0.5, %v1840_v19  ;;  %v4585_v51 = vadd.f32 %v1762_v55, %v4472_v50  ;;  %vm1869_vm15 = vcmp.eq.f32.partialorder %v4558_v58, inf  ;;  %vm1871_vm5 = vcmp.eq.f32.partialorder %v4558_v58, 0.0 }
 0x2bd   : > { %2231 = vst [vmem:[%s4578_s4 + $0x8] sm:$0xff] %v2199_v43  ;;  %v1891_v4 = vmul.f32 %v2585_v56, %v1890_v15  ;;  %v1923_v8 = vmul.f32 %v2589_v33, %v4540_v42  ;;  %v1757_v49 = vmul.f32 %v1725_v36, %v1725_v36  ;;  %v4589_v13 = vadd.f32 %v1750_v20, %v4466_v35 }
 0x2be   : > { %v1842_v41 = vsub.f32 1.5, %v1841_v52  ;;  %v1896_v56 = vand.u32 2147483648, %v4488_v25  ;;  %2592 = vrsqrt.f32 %v4585_v51  ;;  %v1848_v36 = vand.u32 2147483648, %v4506_v62 }
 0x2bf   : > { %v2591_v30 = vpop.eup %2590  ;;  %v1892_v21 = vmul.f32 %v1891_v4, %v4488_v25  ;;  %v1924_v1 = vmul.f32 %v2589_v33, %v1923_v8  ;;  %v4592_v43 = vadd.f32 %v1757_v49, %v4468_v28  ;;  %2594 = vrsqrt.f32 %v4589_v13  ;;  %v1651_v19 = vpop.permute.xlu0 %1650 }
 0x2c0   : > { %v1843_v15 = vmul.f32 %v2587_v14, %v1842_v41  ;;  %v1863_v39 = vmul.f32 %v2591_v30, %v4558_v58  ;;  %v1603_v24 = vpop.permute.xlu1 %1602  ;;  %v1932_v41 = vand.u32 2147483648, %v4540_v42  ;;  %vm1965_vm9 = vcmp.eq.f32.partialorder %v4585_v51, inf }
 0x2c1   : > { %v1894_v50 = vsel %vm1893_vm2, %v4488_v25, %v1892_v21  ;;  %v1925_v53 = vmul.f32 0.5, %v1924_v1  ;;  %2596 = vrsqrt.f32 %v4592_v43  ;;  %vm1821_vm0 = vcmp.eq.f32.partialorder %v4589_v13, inf }
 0x2c2   : > { %v1844_v35 = vmul.f32 %v1843_v15, %v4506_v62  ;;  %v1897_v28 = vsel %vm1895_vm10, %v1896_v56, %v1894_v50  ;;  %v1864_v14 = vmul.f32 %v2591_v30, %v1863_v39  ;;  %v1631_v20 = vpop.permute.xlu2 %1630  ;;  %vm1823_vm7 = vcmp.eq.f32.partialorder %v4589_v13, 0.0 }
 0x2c3   : > { %v2204_v52 = vadd.f32 %v1897_v28, %v4158_v23  ;;  %v1926_v55 = vsub.f32 1.5, %v1925_v53  ;;  %v1728_v50 = vsub.f32 %v1631_v20, %v4435_v63  ;;  %v1733_v53 = vsub.f32 %v1651_v19, %v4435_v63 }
 0x2c4   : > { %v1846_v4 = vsel %vm1845_vm8, %v4506_v62, %v1844_v35  ;;  %v1865_v8 = vmul.f32 0.5, %v1864_v14  ;;  %v2593_v23 = vpop.eup %2592  ;;  %v1721_v62 = vsub.f32 %v1603_v24, %v4435_v63  ;;  %v1872_v35 = vand.u32 2147483648, %v4558_v58 }
 0x2c5   : > { %v1849_v25 = vsel %vm1847_vm12, %v1848_v36, %v1846_v4  ;;  %2236 = vst [vmem:[%s4578_s4 + $0x30] sm:$0xff] %v2204_v52  ;;  %v1927_v49 = vmul.f32 %v2589_v33, %v1926_v55  ;;  %v2595_v15 = vpop.eup %2594  ;;  %v1959_v39 = vmul.f32 %v2593_v23, %v4585_v51  ;;  %v1760_v55 = vmul.f32 %v1728_v50, %v1728_v50 }
 0x2c6   : > { %v2200_v21 = vadd.f32 %v1849_v25, %v4114_v54  ;;  %v1866_v1 = vsub.f32 1.5, %v1865_v8  ;;  %v1815_v54 = vmul.f32 %v2595_v15, %v4589_v13  ;;  %v1753_v28 = vmul.f32 %v1721_v62, %v1721_v62 }
 0x2c7   : > { %v1928_v56 = vmul.f32 %v1927_v49, %v4540_v42  ;;  %v2597_v36 = vpop.eup %2596  ;;  %v1960_v52 = vmul.f32 %v2593_v23, %v1959_v39  ;;  %v1765_v4 = vmul.f32 %v1733_v53, %v1733_v53  ;;  %vm1905_vm13 = vcmp.eq.f32.partialorder %v4592_v43, inf }
 0x2c8   : > { %2232 = vst [vmem:[%s4578_s4 + $0x10] sm:$0xff] %v2200_v21  ;;  %v1867_v33 = vmul.f32 %v2591_v30, %v1866_v1  ;;  %v1611_v14 = vpop.permute.xlu1 %1610  ;;  %v1816_v19 = vmul.f32 %v2595_v15, %v1815_v54  ;;  %v1899_v20 = vmul.f32 %v2597_v36, %v4592_v43  ;;  %v4632_v21 = vadd.f32 %v1753_v28, %v4470_v48 }
 0x2c9   : > { %v1930_v24 = vsel %vm1929_vm3, %v4540_v42, %v1928_v56  ;;  %v1961_v49 = vmul.f32 0.5, %v1960_v52  ;;  %v4635_v1 = vadd.f32 %v1760_v55, %v4475_v9  ;;  %v1663_v42 = vpop.permute.xlu0 %1662  ;;  %v4646_v48 = vadd.f32 %v1765_v4, %v4479_v22 }
 0x2ca   : > { %v1868_v8 = vmul.f32 %v1867_v33, %v4558_v58  ;;  %v1933_v30 = vsel %vm1931_vm1, %v1932_v41, %v1930_v24  ;;  %v1817_v56 = vmul.f32 0.5, %v1816_v19  ;;  %v1900_v39 = vmul.f32 %v2597_v36, %v1899_v20  ;;  %v1643_v22 = vpop.permute.xlu2 %1642 }
 0x2cb   : > { %v2207_v25 = vadd.f32 %v1933_v30, %v4185_v3  ;;  %v1962_v41 = vsub.f32 1.5, %v1961_v49  ;;  %2598 = vrsqrt.f32 %v4632_v21  ;;  %v1824_v54 = vand.u32 2147483648, %v4589_v13 }
 0x2cc   : > { %v1870_v62 = vsel %vm1869_vm15, %v4558_v58, %v1868_v8  ;;  %v1818_v50 = vsub.f32 1.5, %v1817_v56  ;;  %v1901_v53 = vmul.f32 0.5, %v1900_v39  ;;  %2600 = vrsqrt.f32 %v4635_v1 }
 0x2cd   : > { %v1873_v3 = vsel %vm1871_vm5, %v1872_v35, %v1870_v62  ;;  %2239 = vst [vmem:[%s4578_s4 + $0x48] sm:$0xff] %v2207_v25  ;;  %v1963_v33 = vmul.f32 %v2593_v23, %v1962_v41  ;;  %v1736_v58 = vsub.f32 %v1663_v42, %v4435_v63  ;;  %vm1907_vm11 = vcmp.eq.f32.partialorder %v4592_v43, 0.0 }
 0x2ce   : > { %v2202_v9 = vadd.f32 %v1873_v3, %v4138_v34  ;;  %v1819_v35 = vmul.f32 %v2595_v15, %v1818_v50  ;;  %v1902_v28 = vsub.f32 1.5, %v1901_v53  ;;  %v1908_v24 = vand.u32 2147483648, %v4592_v43 }
 0x2cf   : > { %v1964_v52 = vmul.f32 %v1963_v33, %v4585_v51  ;;  %2602 = vrsqrt.f32 %v4646_v48  ;;  %v1968_v15 = vand.u32 2147483648, %v4585_v51  ;;  %v1723_v4 = vsub.f32 %v1611_v14, %v4435_v63 }
 0x2d0   : > { %2234 = vst [vmem:[%s4578_s4 + $0x20] sm:$0xff] %v2202_v9  ;;  %v1623_v34 = vpop.permute.xlu1 %1622  ;;  %v1820_v23 = vmul.f32 %v1819_v35, %v4589_v13  ;;  %v1903_v55 = vmul.f32 %v2597_v36, %v1902_v28  ;;  %vm1967_vm14 = vcmp.eq.f32.partialorder %v4585_v51, 0.0  ;;  %v1731_v19 = vsub.f32 %v1643_v22, %v4435_v63 }
 0x2d1   : > { %v2599_v8 = vpop.eup %2598  ;;  %v1966_v30 = vsel %vm1965_vm9, %v4585_v51, %v1964_v52  ;;  %v1768_v20 = vmul.f32 %v1736_v58, %v1736_v58  ;;  %v1755_v39 = vmul.f32 %v1723_v4, %v1723_v4  ;;  %vm1857_vm4 = vcmp.eq.f32.partialorder %v4632_v21, inf }
 0x2d2   : > { %v1822_v25 = vsel %vm1821_vm0, %v4589_v13, %v1820_v23  ;;  %v1904_v36 = vmul.f32 %v1903_v55, %v4592_v43  ;;  %v1969_v49 = vsel %vm1967_vm14, %v1968_v15, %v1966_v30  ;;  %v1851_v14 = vmul.f32 %v2599_v8, %v4632_v21  ;;  %v2601_v62 = vpop.eup %2600  ;;  %v1675_v55 = vpop.permute.xlu0 %1674 }
 0x2d3   : > { %v1825_v56 = vsel %vm1823_vm7, %v1824_v54, %v1822_v25  ;;  %v2210_v51 = vadd.f32 %v1969_v49, %v4212_v38  ;;  %v1763_v42 = vmul.f32 %v1731_v19, %v1731_v19  ;;  %v1935_v50 = vmul.f32 %v2601_v62, %v4635_v1 }
 0x2d4   : > { %v2198_v3 = vadd.f32 %v1825_v56, %v4162_v57  ;;  %v1906_v41 = vsel %vm1905_vm13, %v4592_v43, %v1904_v36  ;;  %v1852_v9 = vmul.f32 %v2599_v8, %v1851_v14  ;;  %v4685_v13 = vadd.f32 %v1755_v39, %v4477_v60 }
 0x2d5   : > { %v2603_v53 = vpop.eup %2602  ;;  %v1909_v33 = vsel %vm1907_vm11, %v1908_v24, %v1906_v41  ;;  %2242 = vst [vmem:[%s4578_s4 + $0x60] sm:$0xff] %v2210_v51  ;;  %v4688_v38 = vadd.f32 %v1763_v42, %v4482_v26  ;;  %v4691_v57 = vadd.f32 %v1768_v20, %v4486_v18  ;;  %v1936_v54 = vmul.f32 %v2601_v62, %v1935_v50 }
 0x2d6   : > { %2230 = vst [vmem:[%s4578_s4] sm:$0xff] %v2198_v3  ;;  %v2205_v58 = vadd.f32 %v1909_v33, %v4165_v31  ;;  %v1853_v35 = vmul.f32 0.5, %v1852_v9  ;;  %v1995_v28 = vmul.f32 %v2603_v53, %v4646_v48  ;;  %v4698_v43 = vsub.f32 %v4458_v2, %v4432_v45  ;;  %v1655_v31 = vpop.permute.xlu2 %1654  ;;  %v5237_v33 = vld [vmem:[#allocation5_spill] sm:$0xff] }
 0x2d7   : > { %2604 = vrsqrt.f32 %v4685_v13  ;;  %v1726_v60 = vsub.f32 %v1623_v34, %v4435_v63  ;;  %v1937_v22 = vmul.f32 0.5, %v1936_v54  ;;  %vm1859_vm6 = vcmp.eq.f32.partialorder %v4632_v21, 0.0 }
 0x2d8   : > { %v1635_v26 = vpop.permute.xlu1 %1634  ;;  %2237 = vst [vmem:[%s4578_s4 + $0x38] sm:$0xff] %v2205_v58  ;;  %v1854_v18 = vsub.f32 1.5, %v1853_v35  ;;  %v1996_v24 = vmul.f32 %v2603_v53, %v1995_v28  ;;  %2606 = vrsqrt.f32 %v4688_v38  ;;  %v1860_v52 = vand.u32 2147483648, %v4632_v21 }
 0x2d9   : > { %vm1941_vm2 = vcmp.eq.f32.partialorder %v4635_v1, inf  ;;  %2608 = vrsqrt.f32 %v4691_v57  ;;  %v1938_v23 = vsub.f32 1.5, %v1937_v22  ;;  %vm1943_vm10 = vcmp.eq.f32.partialorder %v4635_v1, 0.0 }
 0x2da   : > { %v1855_v2 = vmul.f32 %v2599_v8, %v1854_v18  ;;  %v1997_v34 = vmul.f32 0.5, %v1996_v24  ;;  %v1944_v15 = vand.u32 2147483648, %v4635_v1  ;;  %vm2001_vm8 = vcmp.eq.f32.partialorder %v4646_v48, inf }
 0x2db   : > { %v1758_v4 = vmul.f32 %v1726_v60, %v1726_v60  ;;  %v1734_v30 = vsub.f32 %v1655_v31, %v4435_v63  ;;  %v1939_v20 = vmul.f32 %v2601_v62, %v1938_v23  ;;  %vm2003_vm12 = vcmp.eq.f32.partialorder %v4646_v48, 0.0 }
 0x2dc   : > { %v1856_v19 = vmul.f32 %v1855_v2, %v4632_v21  ;;  %v1998_v25 = vsub.f32 1.5, %v1997_v34  ;;  %v2004_v8 = vand.u32 2147483648, %v4646_v48  ;;  %v1739_v56 = vsub.f32 %v1675_v55, %v4435_v63 }
 0x2dd   : > { %v2605_v36 = vpop.eup %2604  ;;  %v4717_v49 = vadd.f32 %v1758_v4, %v4484_v7  ;;  %v1766_v14 = vmul.f32 %v1734_v30, %v1734_v30  ;;  %v1940_v42 = vmul.f32 %v1939_v20, %v4635_v1  ;;  %v1729_v50 = vsub.f32 %v1635_v26, %v4435_v63  ;;  %v5238_v26 = vld [vmem:[#allocation6_spill] sm:$0xff] }
 0x2de   : > { %v2607_v51 = vpop.eup %2606  ;;  %v1858_v39 = vsel %vm1857_vm4, %v4632_v21, %v1856_v19  ;;  %v1999_v62 = vmul.f32 %v2603_v53, %v1998_v25  ;;  %v1875_v3 = vmul.f32 %v2605_v36, %v4685_v13  ;;  %vm1881_vm3 = vcmp.eq.f32.partialorder %v4685_v13, inf  ;;  %v1667_v55 = vpop.permute.xlu2 %1666 }
 0x2df   : > { %v2609_v41 = vpop.eup %2608  ;;  %v1861_v9 = vsel %vm1859_vm6, %v1860_v52, %v1858_v39  ;;  %v1971_v7 = vmul.f32 %v2607_v51, %v4688_v38  ;;  %2610 = vrsqrt.f32 %v4717_v49  ;;  %v1942_v35 = vsel %vm1941_vm2, %v4635_v1, %v1940_v42 }
 0x2e0   : > { %v2201_v58 = vadd.f32 %v1861_v9, %v5237_v33  ;;  %v2000_v53 = vmul.f32 %v1999_v62, %v4646_v48  ;;  %v1876_v54 = vmul.f32 %v2605_v36, %v1875_v3  ;;  %v1945_v28 = vsel %vm1943_vm10, %v1944_v15, %v1942_v35  ;;  %v4739_v18 = vpop.permute.xlu1 %1646  ;;  %v5239_v15 = vld [vmem:[#allocation12_spill] sm:$0xff]  ;;  %v1687_v9 = vpop.permute.xlu0 %1686 }
 0x2e1   : > { %v1972_v21 = vmul.f32 %v2607_v51, %v1971_v7  ;;  %v2031_v60 = vmul.f32 %v2609_v41, %v4691_v57  ;;  %v2208_v22 = vadd.f32 %v1945_v28, %v5238_v26  ;;  %vm1883_vm1 = vcmp.eq.f32.partialorder %v4685_v13, 0.0  ;;  %v5240_v26 = vld [vmem:[#allocation7_spill] sm:$0xff] }
 0x2e2   : > { %2233 = vst [vmem:[%s4578_s4 + $0x18] sm:$0xff] %v2201_v58  ;;  %v2002_v24 = vsel %vm2001_vm8, %v4646_v48, %v2000_v53  ;;  %v1877_v31 = vmul.f32 0.5, %v1876_v54  ;;  %v1884_v1 = vand.u32 2147483648, %v4685_v13  ;;  %v4751_v34 = vadd.f32 %v1766_v14, %v4495_v37 }
 0x2e3   : > { %v2005_v52 = vsel %vm2003_vm12, %v2004_v8, %v2002_v24  ;;  %v1973_v2 = vmul.f32 0.5, %v1972_v21  ;;  %v2032_v23 = vmul.f32 %v2609_v41, %v2031_v60  ;;  %2240 = vst [vmem:[%s4578_s4 + $0x50] sm:$0xff] %v2208_v22  ;;  %v1771_v19 = vmul.f32 %v1739_v56, %v1739_v56 }
 0x2e4   : > { %v2213_v4 = vadd.f32 %v2005_v52, %v5239_v15  ;;  %v1878_v30 = vsub.f32 1.5, %v1877_v31  ;;  %v1761_v20 = vmul.f32 %v1729_v50, %v1729_v50  ;;  %vm1977_vm15 = vcmp.eq.f32.partialorder %v4688_v38, inf  ;;  %v5241_v52 = vld [vmem:[#allocation8_spill] sm:$0xff] }
 0x2e5   : > { %v2611_v25 = vpop.eup %2610  ;;  %v1974_v39 = vsub.f32 1.5, %v1973_v2  ;;  %v2033_v42 = vmul.f32 0.5, %v2032_v23  ;;  %2612 = vrsqrt.f32 %v4751_v34  ;;  %vm1979_vm5 = vcmp.eq.f32.partialorder %v4688_v38, 0.0 }
 0x2e6   : > { %2245 = vst [vmem:[%s4578_s4 + $0x78] sm:$0xff] %v2213_v4  ;;  %v1879_v48 = vmul.f32 %v2605_v36, %v1878_v30  ;;  %v1911_v37 = vmul.f32 %v2611_v25, %v4717_v49  ;;  %v1737_v8 = vsub.f32 %v1667_v55, %v4435_v63  ;;  %v4762_v56 = vadd.f32 %v1771_v19, %v4519_v17  ;;  %v1679_v55 = vpop.permute.xlu2 %1678 }
 0x2e7   : > { %v1975_v14 = vmul.f32 %v2607_v51, %v1974_v39  ;;  %v2034_v62 = vsub.f32 1.5, %v2033_v42  ;;  %v4765_v3 = vadd.f32 %v1761_v20, %v4517_v12  ;;  %v1980_v50 = vand.u32 2147483648, %v4688_v38 }
 0x2e8   : > { %v1880_v7 = vmul.f32 %v1879_v48, %v4685_v13  ;;  %vm2037_vm9 = vcmp.eq.f32.partialorder %v4691_v57, inf  ;;  %v1912_v36 = vmul.f32 %v2611_v25, %v1911_v37  ;;  %v2040_v51 = vand.u32 2147483648, %v4691_v57  ;;  %v4784_v60 = vpop.permute.xlu1 %1658 }
 0x2e9   : > { %v1976_v33 = vmul.f32 %v1975_v14, %v4688_v38  ;;  %v2035_v58 = vmul.f32 %v2609_v41, %v2034_v62  ;;  %2614 = vrsqrt.f32 %v4762_v56  ;;  %v1769_v35 = vmul.f32 %v1737_v8, %v1737_v8 }
 0x2ea   : > { %v1882_v12 = vsel %vm1881_vm3, %v4685_v13, %v1880_v7  ;;  %v1913_v17 = vmul.f32 0.5, %v1912_v36  ;;  %v1742_v53 = vsub.f32 %v1687_v9, %v4435_v63  ;;  %2616 = vrsqrt.f32 %v4765_v3  ;;  %v5242_v36 = vld [vmem:[#allocation9_spill] sm:$0xff] }
 0x2eb   : > { %v2613_v54 = vpop.eup %2612  ;;  %v1885_v28 = vsel %vm1883_vm1, %v1884_v1, %v1882_v12  ;;  %v1978_v41 = vsel %vm1977_vm15, %v4688_v38, %v1976_v33  ;;  %v2036_v21 = vmul.f32 %v2035_v58, %v4691_v57  ;;  %v4792_v1 = vmul.f32 %v4698_v43, %v4698_v43 }
 0x2ec   : > { %v2203_v22 = vadd.f32 %v1885_v28, %v5240_v26  ;;  %v1981_v24 = vsel %vm1979_vm5, %v1980_v50, %v1978_v41  ;;  %v1914_v31 = vsub.f32 1.5, %v1913_v17  ;;  %v2007_v13 = vmul.f32 %v2613_v54, %v4751_v34 }
 0x2ed   : > { %v2211_v2 = vadd.f32 %v1981_v24, %v5241_v52  ;;  %v2038_v23 = vsel %vm2037_vm9, %v4691_v57, %v2036_v21  ;;  %vm2039_vm0 = vcmp.eq.f32.partialorder %v4691_v57, 0.0  ;;  %vm1917_vm7 = vcmp.eq.f32.partialorder %v4717_v49, inf }
 0x2ee   : > { %2235 = vst [vmem:[%s4578_s4 + $0x28] sm:$0xff] %v2203_v22  ;;  %v2041_v38 = vsel %vm2039_vm0, %v2040_v51, %v2038_v23  ;;  %v1915_v15 = vmul.f32 %v2611_v25, %v1914_v31  ;;  %v2008_v4 = vmul.f32 %v2613_v54, %v2007_v13  ;;  %v4804_v19 = vadd.f32 %v1769_v35, %v4522_v11 }
 0x2ef   : > { %v2615_v30 = vpop.eup %2614  ;;  %2243 = vst [vmem:[%s4578_s4 + $0x68] sm:$0xff] %v2211_v2  ;;  %v2216_v43 = vadd.f32 %v2041_v38, %v4266_v29  ;;  %v1774_v20 = vmul.f32 %v1742_v53, %v1742_v53  ;;  %v1732_v39 = vsub.f32 %v4739_v18, %v4435_v63  ;;  %v1740_v25 = vsub.f32 %v1679_v55, %v4435_v63  ;;  %v5243_v2 = vld [vmem:[#allocation16_spill] sm:$0xff] }
 0x2f0   : > { %v1916_v57 = vmul.f32 %v1915_v15, %v4717_v49  ;;  %v2009_v42 = vmul.f32 0.5, %v2008_v4  ;;  %v2067_v48 = vmul.f32 %v2615_v30, %v4762_v56  ;;  %v2617_v37 = vpop.eup %2616  ;;  %vm1919_vm13 = vcmp.eq.f32.partialorder %v4717_v49, 0.0  ;;  %v4828_v17 = vpop.permute.xlu1 %1670 }
 0x2f1   : > { %2248 = vst [vmem:[%s4578_s4 + $0x90] sm:$0xff] %v2216_v43  ;;  %v1920_v29 = vand.u32 2147483648, %v4717_v49  ;;  %vm2013_vm11 = vcmp.eq.f32.partialorder %v4751_v34, inf  ;;  %2618 = vrsqrt.f32 %v4804_v19  ;;  %v1947_v14 = vmul.f32 %v2617_v37, %v4765_v3  ;;  %v1691_v4 = vpop.permute.xlu2 %1690 }
 0x2f2   : > { %v1918_v11 = vsel %vm1917_vm7, %v4717_v49, %v1916_v57  ;;  %v2010_v18 = vsub.f32 1.5, %v2009_v42  ;;  %v2068_v8 = vmul.f32 %v2615_v30, %v2067_v48  ;;  %v4821_v9 = vadd.f32 %v1774_v20, %v4524_v5 }
 0x2f3   : > { %v1921_v62 = vsel %vm1919_vm13, %v1920_v29, %v1918_v11  ;;  %v1764_v7 = vmul.f32 %v1732_v39, %v1732_v39  ;;  %v1772_v50 = vmul.f32 %v1740_v25, %v1740_v25  ;;  %v1948_v12 = vmul.f32 %v2617_v37, %v1947_v14 }
 0x2f4   : > { %v2206_v33 = vadd.f32 %v1921_v62, %v5242_v36  ;;  %v2011_v58 = vmul.f32 %v2613_v54, %v2010_v18  ;;  %v2069_v51 = vmul.f32 0.5, %v2068_v8  ;;  %vm2015_vm14 = vcmp.eq.f32.partialorder %v4751_v34, 0.0  ;;  %v1699_v54 = vpop.permute.xlu0 %1698 }
 0x2f5   : > { %v2016_v49 = vand.u32 2147483648, %v4751_v34  ;;  %vm2073_vm4 = vcmp.eq.f32.partialorder %v4762_v56, inf  ;;  %2620 = vrsqrt.f32 %v4821_v9  ;;  %v1949_v53 = vmul.f32 0.5, %v1948_v12 }
 0x2f6   : > { %2238 = vst [vmem:[%s4578_s4 + $0x40] sm:$0xff] %v2206_v33  ;;  %v2012_v5 = vmul.f32 %v2011_v58, %v4751_v34  ;;  %v2070_v35 = vsub.f32 1.5, %v2069_v51  ;;  %v4833_v28 = vadd.f32 %v1764_v7, %v4528_v6  ;;  %vm2075_vm6 = vcmp.eq.f32.partialorder %v4762_v56, 0.0 }
 0x2f7   : > { %v2619_v41 = vpop.eup %2618  ;;  %v2076_v21 = vand.u32 2147483648, %v4762_v56  ;;  %vm1953_vm2 = vcmp.eq.f32.partialorder %v4765_v3, inf  ;;  %v4839_v26 = vadd.f32 %v1772_v50, %v4530_v61  ;;  %v1950_v31 = vsub.f32 1.5, %v1949_v53 }
 0x2f8   : > { %v2014_v22 = vsel %vm2013_vm11, %v4751_v34, %v2012_v5  ;;  %v2071_v24 = vmul.f32 %v2615_v30, %v2070_v35  ;;  %v2043_v6 = vmul.f32 %v2619_v41, %v4804_v19  ;;  %2622 = vrsqrt.f32 %v4833_v28 }
 0x2f9   : > { %v2017_v13 = vsel %vm2015_vm14, %v2016_v49, %v2014_v22  ;;  %v1745_v52 = vsub.f32 %v1699_v54, %v4435_v63  ;;  %v1735_v61 = vsub.f32 %v4784_v60, %v4435_v63  ;;  %v1951_v38 = vmul.f32 %v2617_v37, %v1950_v31 }
 0x2fa   : > { %v2214_v23 = vadd.f32 %v2017_v13, %v5243_v2  ;;  %v2072_v55 = vmul.f32 %v2071_v24, %v4762_v56  ;;  %v2044_v15 = vmul.f32 %v2619_v41, %v2043_v6  ;;  %vm1955_vm10 = vcmp.eq.f32.partialorder %v4765_v3, 0.0  ;;  %v1703_v2 = vpop.permute.xlu2 %1702 }
 0x2fb   : > { %v2621_v30 = vpop.eup %2620  ;;  %v1956_v34 = vand.u32 2147483648, %v4765_v3  ;;  %vm2049_vm8 = vcmp.eq.f32.partialorder %v4804_v19, inf  ;;  %2624 = vrsqrt.f32 %v4839_v26  ;;  %v1952_v43 = vmul.f32 %v1951_v38, %v4765_v3 }
 0x2fc   : > { %2246 = vst [vmem:[%s4578_s4 + $0x80] sm:$0xff] %v2214_v23  ;;  %v2074_v60 = vsel %vm2073_vm4, %v4762_v56, %v2072_v55  ;;  %v2045_v20 = vmul.f32 0.5, %v2044_v15  ;;  %v2103_v39 = vmul.f32 %v2621_v30, %v4821_v9  ;;  %v1777_v42 = vmul.f32 %v1745_v52, %v1745_v52 }
 0x2fd   : > { %v2077_v57 = vsel %vm2075_vm6, %v2076_v21, %v2074_v60  ;;  %v1767_v48 = vmul.f32 %v1735_v61, %v1735_v61  ;;  %v1743_v25 = vsub.f32 %v1691_v4, %v4435_v63  ;;  %v1954_v29 = vsel %vm1953_vm2, %v4765_v3, %v1952_v43  ;;  %v5244_v43 = vld [vmem:[#allocation13_spill] sm:$0xff] }
 0x2fe   : > { %v2219_v37 = vadd.f32 %v2077_v57, %v4291_v32  ;;  %v2046_v11 = vsub.f32 1.5, %v2045_v20  ;;  %v2104_v18 = vmul.f32 %v2621_v30, %v2103_v39  ;;  %v2623_v8 = vpop.eup %2622  ;;  %v1957_v14 = vsel %vm1955_vm10, %v1956_v34, %v1954_v29  ;;  %v4879_v32 = vpop.permute.xlu1 %1682 }
 0x2ff   : > { %vm2051_vm12 = vcmp.eq.f32.partialorder %v4804_v19, 0.0  ;;  %v4874_v56 = vadd.f32 %v1777_v42, %v4537_v27  ;;  %v4877_v62 = vadd.f32 %v1767_v48, %v4533_v0  ;;  %v2209_v7 = vadd.f32 %v1957_v14, %v4270_v47  ;;  %v1711_v47 = vpop.permute.xlu0 %1710 }
 0x300   : > { %2251 = vst [vmem:[%s4578_s4 + $0xa8] sm:$0xff] %v2219_v37  ;;  %v2047_v50 = vmul.f32 %v2619_v41, %v2046_v11  ;;  %v2105_v36 = vmul.f32 0.5, %v2104_v18  ;;  %v1983_v33 = vmul.f32 %v2623_v8, %v4833_v28  ;;  %v2052_v58 = vand.u32 2147483648, %v4804_v19  ;;  %v5245_v37 = vld [vmem:[#allocation26_spill] sm:$0xff] }
 0x301   : > { %v2625_v3 = vpop.eup %2624  ;;  %vm2109_vm3 = vcmp.eq.f32.partialorder %v4821_v9, inf  ;;  %2626 = vrsqrt.f32 %v4874_v56  ;;  %v1775_v27 = vmul.f32 %v1743_v25, %v1743_v25  ;;  %2241 = vst [vmem:[%s4578_s4 + $0x58] sm:$0xff] %v2209_v7  ;;  %vm2111_vm1 = vcmp.eq.f32.partialorder %v4821_v9, 0.0 }
 0x302   : > { %v2048_v0 = vmul.f32 %v2047_v50, %v4804_v19  ;;  %v2106_v51 = vsub.f32 1.5, %v2105_v36  ;;  %v1984_v12 = vmul.f32 %v2623_v8, %v1983_v33  ;;  %v2079_v49 = vmul.f32 %v2625_v3, %v4839_v26  ;;  %v5246_v33 = vld [vmem:[#allocation10_spill] sm:$0xff] }
 0x303   : > { %v2112_v5 = vand.u32 2147483648, %v4821_v9  ;;  %vm1989_vm15 = vcmp.eq.f32.partialorder %v4833_v28, inf  ;;  %2628 = vrsqrt.f32 %v4877_v62  ;;  %v4900_v22 = vadd.f32 %v1775_v27, %v4535_v46 }
 0x304   : > { %v2050_v35 = vsel %vm2049_vm8, %v4804_v19, %v2048_v0  ;;  %v2107_v53 = vmul.f32 %v2621_v30, %v2106_v51  ;;  %v1985_v54 = vmul.f32 0.5, %v1984_v12  ;;  %v2080_v41 = vmul.f32 %v2625_v3, %v2079_v49  ;;  %v5247_v12 = vld [vmem:[#allocation17_spill] sm:$0xff] }
 0x305   : > { %v2053_v21 = vsel %vm2051_vm12, %v2052_v58, %v2050_v35  ;;  %v1748_v24 = vsub.f32 %v1711_v47, %v4435_v63  ;;  %v1738_v31 = vsub.f32 %v4828_v17, %v4435_v63  ;;  %vm1991_vm5 = vcmp.eq.f32.partialorder %v4833_v28, 0.0  ;;  %v1715_v35 = vpop.permute.xlu2 %1714 }
 0x306   : > { %v2217_v6 = vadd.f32 %v2053_v21, %v4273_v16  ;;  %v2108_v13 = vmul.f32 %v2107_v53, %v4821_v9  ;;  %v1986_v52 = vsub.f32 1.5, %v1985_v54  ;;  %v2081_v61 = vmul.f32 0.5, %v2080_v41  ;;  %v1695_v60 = vpop.permute.xlu1 %1694 }
 0x307   : > { %v2627_v23 = vpop.eup %2626  ;;  %v1992_v19 = vand.u32 2147483648, %v4833_v28  ;;  %vm2085_vm9 = vcmp.eq.f32.partialorder %v4839_v26, inf  ;;  %2630 = vrsqrt.f32 %v4900_v22  ;;  %v1780_v4 = vmul.f32 %v1748_v24, %v1748_v24 }
 0x308   : > { %2249 = vst [vmem:[%s4578_s4 + $0x98] sm:$0xff] %v2217_v6  ;;  %v2110_v46 = vsel %vm2109_vm3, %v4821_v9, %v2108_v13  ;;  %v1987_v16 = vmul.f32 %v2623_v8, %v1986_v52  ;;  %v2082_v17 = vsub.f32 1.5, %v2081_v61  ;;  %v2139_v55 = vmul.f32 %v2627_v23, %v4874_v56 }
 0x309   : > { %v2629_v38 = vpop.eup %2628  ;;  %v2113_v15 = vsel %vm2111_vm1, %v2112_v5, %v2110_v46  ;;  %v1770_v30 = vmul.f32 %v1738_v31, %v1738_v31  ;;  %v1746_v34 = vsub.f32 %v1703_v2, %v4435_v63  ;;  %vm2087_vm0 = vcmp.eq.f32.partialorder %v4839_v26, 0.0 }
 0x30a   : > { %v2222_v20 = vadd.f32 %v2113_v15, %v5244_v43  ;;  %v1988_v39 = vmul.f32 %v1987_v16, %v4833_v28  ;;  %v2083_v57 = vmul.f32 %v2625_v3, %v2082_v17  ;;  %v2140_v42 = vmul.f32 %v2627_v23, %v2139_v55  ;;  %v5248_v17 = vld [vmem:[#allocation15_spill] sm:$0xff] }
 0x30b   : > { %v2088_v48 = vand.u32 2147483648, %v4839_v26  ;;  %v2019_v25 = vmul.f32 %v2629_v38, %v4877_v62  ;;  %v4925_v9 = vadd.f32 %v1780_v4, %v5245_v37  ;;  %v4933_v8 = vadd.f32 %v1770_v30, %v4567_v59 }
 0x30c   : > { %2254 = vst [vmem:[%s4578_s4 + $0xc0] sm:$0xff] %v2222_v20  ;;  %v1990_v29 = vsel %vm1989_vm15, %v4833_v28, %v1988_v39  ;;  %v2084_v11 = vmul.f32 %v2083_v57, %v4839_v26  ;;  %v2141_v18 = vmul.f32 0.5, %v2140_v42  ;;  %v1778_v36 = vmul.f32 %v1746_v34, %v1746_v34 }
 0x30d   : > { %v2631_v14 = vpop.eup %2630  ;;  %v1993_v7 = vsel %vm1991_vm5, %v1992_v19, %v1990_v29  ;;  %v2020_v50 = vmul.f32 %v2629_v38, %v2019_v25  ;;  %2632 = vrsqrt.f32 %v4925_v9  ;;  %vm2145_vm7 = vcmp.eq.f32.partialorder %v4874_v56, inf }
 0x30e   : > { %v2212_v3 = vadd.f32 %v1993_v7, %v5246_v33  ;;  %v2086_v58 = vsel %vm2085_vm9, %v4839_v26, %v2084_v11  ;;  %v2142_v27 = vsub.f32 1.5, %v2141_v18  ;;  %v2115_v0 = vmul.f32 %v2631_v14, %v4900_v22  ;;  %v1707_v52 = vpop.permute.xlu1 %1706 }
 0x30f   : > { %v2089_v59 = vsel %vm2087_vm0, %v2088_v48, %v2086_v58  ;;  %v2021_v28 = vmul.f32 0.5, %v2020_v50  ;;  %v1741_v51 = vsub.f32 %v4879_v32, %v4435_v63  ;;  %2634 = vrsqrt.f32 %v4933_v8 }
 0x310   : > { %2244 = vst [vmem:[%s4578_s4 + $0x70] sm:$0xff] %v2212_v3  ;;  %v2220_v49 = vadd.f32 %v2089_v59, %v5247_v12  ;;  %v2143_v47 = vmul.f32 %v2627_v23, %v2142_v27  ;;  %v2116_v5 = vmul.f32 %v2631_v14, %v2115_v0  ;;  %vm2147_vm13 = vcmp.eq.f32.partialorder %v4874_v56, 0.0 }
 0x311   : > { %v2148_v53 = vand.u32 2147483648, %v4874_v56  ;;  %v2022_v26 = vsub.f32 1.5, %v2021_v28  ;;  %vm2025_vm11 = vcmp.eq.f32.partialorder %v4877_v62, inf  ;;  %vm2027_vm14 = vcmp.eq.f32.partialorder %v4877_v62, 0.0 }
 0x312   : > { %2252 = vst [vmem:[%s4578_s4 + $0xb0] sm:$0xff] %v2220_v49  ;;  %v2144_v54 = vmul.f32 %v2143_v47, %v4874_v56  ;;  %v2117_v32 = vmul.f32 0.5, %v2116_v5  ;;  %v4958_v41 = vadd.f32 %v1778_v36, %v4569_v44  ;;  %v1773_v31 = vmul.f32 %v1741_v51, %v1741_v51  ;;  %v5251_v36 = vld [vmem:[#allocation19_spill] sm:$0xff] }
 0x313   : > { %v2633_v21 = vpop.eup %2632  ;;  %v2023_v24 = vmul.f32 %v2629_v38, %v2022_v26  ;;  %v1749_v6 = vsub.f32 %v1715_v35, %v4435_v63  ;;  %v1744_v13 = vsub.f32 %v1695_v60, %v4435_v63  ;;  %v2028_v46 = vand.u32 2147483648, %v4877_v62  ;;  %v5252_v26 = vld [vmem:[#allocation18_spill] sm:$0xff] }
 0x314   : > { %v2146_v61 = vsel %vm2145_vm7, %v4874_v56, %v2144_v54  ;;  %v2118_v2 = vsub.f32 1.5, %v2117_v32  ;;  %v2175_v23 = vmul.f32 %v2633_v21, %v4925_v9  ;;  %2636 = vrsqrt.f32 %v4958_v41 }
 0x315   : > { %v2149_v44 = vsel %vm2147_vm13, %v2148_v53, %v2146_v61  ;;  %v2024_v19 = vmul.f32 %v2023_v24, %v4877_v62  ;;  %vm2121_vm4 = vcmp.eq.f32.partialorder %v4900_v22, inf  ;;  %v2635_v16 = vpop.eup %2634  ;;  %v1747_v4 = vsub.f32 %v1707_v52, %v4435_v63  ;;  %v5249_v63 = vld [vmem:[#allocation11_spill] sm:$0xff] }
 0x316   : > { %v2225_v55 = vadd.f32 %v2149_v44, %v5248_v17  ;;  %v2119_v38 = vmul.f32 %v2631_v14, %v2118_v2  ;;  %v2176_v15 = vmul.f32 %v2633_v21, %v2175_v23  ;;  %v2055_v56 = vmul.f32 %v2635_v16, %v4933_v8  ;;  %v5253_v2 = vld [vmem:[#allocation14_spill] sm:$0xff] }
 0x317   : > { %v2026_v30 = vsel %vm2025_vm11, %v4877_v62, %v2024_v19  ;;  %v4979_v34 = vadd.f32 %v1773_v31, %v4574_v10  ;;  %v1781_v60 = vmul.f32 %v1749_v6, %v1749_v6  ;;  %v1776_v57 = vmul.f32 %v1744_v13, %v1744_v13  ;;  %v5250_v10 = vld [vmem:[#allocation25_spill] sm:$0xff] }
 0x318   : > { %2257 = vst [vmem:[%s4578_s4 + $0xd8] sm:$0xff] %v2225_v55  ;;  %v2029_v43 = vsel %vm2027_vm14, %v2028_v46, %v2026_v30  ;;  %v2120_v20 = vmul.f32 %v2119_v38, %v4900_v22  ;;  %v2177_v39 = vmul.f32 0.5, %v2176_v15  ;;  %v2124_v48 = vand.u32 2147483648, %v4900_v22 }
 0x319   : > { %v2215_v42 = vadd.f32 %v2029_v43, %v5249_v63  ;;  %v2056_v25 = vmul.f32 %v2635_v16, %v2055_v56  ;;  %2638 = vrsqrt.f32 %v4979_v34  ;;  %v1554_v29 = vsub.f32 %v5250_v10, %v4432_v45  ;;  %v5254_v56 = vld [vmem:[#allocation21_spill] sm:$0xff] }
 0x31a   : > { %v2637_v37 = vpop.eup %2636  ;;  %v2122_v62 = vsel %vm2121_vm4, %v4900_v22, %v2120_v20  ;;  %vm2123_vm6 = vcmp.eq.f32.partialorder %v4900_v22, 0.0  ;;  %v2178_v11 = vsub.f32 1.5, %v2177_v39  ;;  %v4997_v50 = vadd.f32 %v1781_v60, %v4576_v40 }
 0x31b   : > { %2247 = vst [vmem:[%s4578_s4 + $0x88] sm:$0xff] %v2215_v42  ;;  %v2125_v18 = vsel %vm2123_vm6, %v2124_v48, %v2122_v62  ;;  %v2057_v14 = vmul.f32 0.5, %v2056_v25  ;;  %v2151_v7 = vmul.f32 %v2637_v37, %v4958_v41  ;;  %v5001_v45 = vadd.f32 %v1776_v57, %v4792_v1  ;;  %v5255_v62 = vld [vmem:[#allocation20_spill] sm:$0xff] }
 0x31c   : > { %v2223_v33 = vadd.f32 %v2125_v18, %v5251_v36  ;;  %v2179_v3 = vmul.f32 %v2633_v21, %v2178_v11  ;;  %v1779_v58 = vmul.f32 %v1747_v4, %v1747_v4  ;;  %2640 = vrsqrt.f32 %v4997_v50 }
 0x31d   : > { %v2058_v27 = vsub.f32 1.5, %v2057_v14  ;;  %v2152_v0 = vmul.f32 %v2637_v37, %v2151_v7  ;;  %v1586_v22 = vmul.f32 %v1554_v29, %v1554_v29  ;;  %2642 = vrsqrt.f32 %v5001_v45 }
 0x31e   : > { %2255 = vst [vmem:[%s4578_s4 + $0xc8] sm:$0xff] %v2223_v33  ;;  %v2180_v59 = vmul.f32 %v2179_v3, %v4925_v9  ;;  %vm2181_vm2 = vcmp.eq.f32.partialorder %v4925_v9, inf  ;;  %v2184_v40 = vand.u32 2147483648, %v4925_v9  ;;  %vm2183_vm10 = vcmp.eq.f32.partialorder %v4925_v9, 0.0 }
 0x31f   : > { %v2639_v28 = vpop.eup %2638  ;;  %v2059_v51 = vmul.f32 %v2635_v16, %v2058_v27  ;;  %v2153_v12 = vmul.f32 0.5, %v2152_v0  ;;  %v5012_v47 = vadd.f32 %v1779_v58, %v1586_v22  ;;  %vm2061_vm8 = vcmp.eq.f32.partialorder %v4933_v8, inf  ;;  %v5256_v0 = vld [vmem:[#allocation22_spill] sm:$0xff] }
 0x320   : > { %v2182_v1 = vsel %vm2181_vm2, %v4925_v9, %v2180_v59  ;;  %v2091_v49 = vmul.f32 %v2639_v28, %v4979_v34  ;;  %v2064_v32 = vand.u32 2147483648, %v4933_v8  ;;  %vm2063_vm12 = vcmp.eq.f32.partialorder %v4933_v8, 0.0 }
 0x321   : > { %v2185_v5 = vsel %vm2183_vm10, %v2184_v40, %v2182_v1  ;;  %v2060_v35 = vmul.f32 %v2059_v51, %v4933_v8  ;;  %v2154_v53 = vsub.f32 1.5, %v2153_v12  ;;  %2644 = vrsqrt.f32 %v5012_v47  ;;  %v5258_v1 = vld [vmem:[#allocation24_spill] sm:$0xff] }
 0x322   : > { %v2228_v54 = vadd.f32 %v2185_v5, %v5252_v26  ;;  %v2092_v21 = vmul.f32 %v2639_v28, %v2091_v49  ;;  %v2641_v24 = vpop.eup %2640  ;;  %vm2157_vm3 = vcmp.eq.f32.partialorder %v4958_v41, inf  ;;  %v2160_v46 = vand.u32 2147483648, %v4958_v41 }
 0x323   : > { %v2062_v9 = vsel %vm2061_vm8, %v4933_v8, %v2060_v35  ;;  %v2155_v31 = vmul.f32 %v2637_v37, %v2154_v53  ;;  %v2643_v6 = vpop.eup %2642  ;;  %v2187_v61 = vmul.f32 %v2641_v24, %v4997_v50  ;;  %vm2159_vm1 = vcmp.eq.f32.partialorder %v4958_v41, 0.0 }
 0x324   : > { %2260 = vst [vmem:[%s4578_s4 + $0xf0] sm:$0xff] %v2228_v54  ;;  %v2065_v13 = vsel %vm2063_vm12, %v2064_v32, %v2062_v9  ;;  %v2093_v52 = vmul.f32 0.5, %v2092_v21  ;;  %v2127_v19 = vmul.f32 %v2643_v6, %v5001_v45  ;;  %vm2097_vm15 = vcmp.eq.f32.partialorder %v4979_v34, inf }
 0x325   : > { %v2218_v23 = vadd.f32 %v2065_v13, %v5253_v2  ;;  %v2156_v44 = vmul.f32 %v2155_v31, %v4958_v41  ;;  %v2188_v8 = vmul.f32 %v2641_v24, %v2187_v61  ;;  %v2100_v63 = vand.u32 2147483648, %v4979_v34 }
 0x326   : > { %v2094_v16 = vsub.f32 1.5, %v2093_v52  ;;  %v2128_v55 = vmul.f32 %v2643_v6, %v2127_v19  ;;  %vm2099_vm5 = vcmp.eq.f32.partialorder %v4979_v34, 0.0  ;;  %vm2193_vm9 = vcmp.eq.f32.partialorder %v4997_v50, inf }
 0x327   : > { %2250 = vst [vmem:[%s4578_s4 + $0xa0] sm:$0xff] %v2218_v23  ;;  %v2158_v17 = vsel %vm2157_vm3, %v4958_v41, %v2156_v44  ;;  %v2645_v38 = vpop.eup %2644  ;;  %v2189_v30 = vmul.f32 0.5, %v2188_v8  ;;  %v2196_v14 = vand.u32 2147483648, %v4997_v50  ;;  %vm2195_vm0 = vcmp.eq.f32.partialorder %v4997_v50, 0.0 }
 0x328   : > { %v2161_v15 = vsel %vm2159_vm1, %v2160_v46, %v2158_v17  ;;  %v2095_v4 = vmul.f32 %v2639_v28, %v2094_v16  ;;  %v2129_v43 = vmul.f32 0.5, %v2128_v55  ;;  %v2163_v20 = vmul.f32 %v2645_v38, %v5012_v47 }
 0x329   : > { %v2226_v60 = vadd.f32 %v2161_v15, %v5254_v56  ;;  %v2190_v57 = vsub.f32 1.5, %v2189_v30  ;;  %vm2133_vm7 = vcmp.eq.f32.partialorder %v5001_v45, inf  ;;  %v2136_v33 = vand.u32 2147483648, %v5001_v45 }
 0x32a   : > { %v2096_v39 = vmul.f32 %v2095_v4, %v4979_v34  ;;  %v2130_v41 = vsub.f32 1.5, %v2129_v43  ;;  %v2164_v42 = vmul.f32 %v2645_v38, %v2163_v20  ;;  %vm2135_vm13 = vcmp.eq.f32.partialorder %v5001_v45, 0.0 }
 0x32b   : > { %2258 = vst [vmem:[%s4578_s4 + $0xe0] sm:$0xff] %v2226_v60  ;;  %v2191_v25 = vmul.f32 %v2641_v24, %v2190_v57  ;;  %vm2169_vm11 = vcmp.eq.f32.partialorder %v5012_v47, inf  ;;  %v2172_v51 = vand.u32 2147483648, %v5012_v47  ;;  %vm2171_vm14 = vcmp.eq.f32.partialorder %v5012_v47, 0.0 }
 0x32c   : > { %v2098_v48 = vsel %vm2097_vm15, %v4979_v34, %v2096_v39  ;;  %v2131_v10 = vmul.f32 %v2643_v6, %v2130_v41  ;;  %v2165_v29 = vmul.f32 0.5, %v2164_v42 }
 0x32d   : > { %v2101_v37 = vsel %vm2099_vm5, %v2100_v63, %v2098_v48  ;;  %v2192_v18 = vmul.f32 %v2191_v25, %v4997_v50 }
 0x32e   : > { %v2221_v11 = vadd.f32 %v2101_v37, %v5255_v62  ;;  %v2132_v7 = vmul.f32 %v2131_v10, %v5001_v45  ;;  %v2166_v36 = vsub.f32 1.5, %v2165_v29 }
 0x32f   : > { %v2194_v34 = vsel %vm2193_vm9, %v4997_v50, %v2192_v18  ;;  %v5257_v50 = vld [vmem:[#allocation23_spill] sm:$0xff] }
 0x330   : > { %2253 = vst [vmem:[%s4578_s4 + $0xb8] sm:$0xff] %v2221_v11  ;;  %v2197_v3 = vsel %vm2195_vm0, %v2196_v14, %v2194_v34  ;;  %v2134_v58 = vsel %vm2133_vm7, %v5001_v45, %v2132_v7  ;;  %v2167_v27 = vmul.f32 %v2645_v38, %v2166_v36 }
 0x331   : > { %v2229_v22 = vadd.f32 %v2197_v3, %v5256_v0  ;;  %v2137_v59 = vsel %vm2135_vm13, %v2136_v33, %v2134_v58 }
 0x332   : > { %v2224_v28 = vadd.f32 %v2137_v59, %v5257_v50  ;;  %v2168_v40 = vmul.f32 %v2167_v27, %v5012_v47 }
 0x333   : > { %2261 = vst [vmem:[%s4578_s4 + $0xf8] sm:$0xff] %v2229_v22 }
 0x334   : > { %2256 = vst [vmem:[%s4578_s4 + $0xd0] sm:$0xff] %v2224_v28  ;;  %v2170_v45 = vsel %vm2169_vm11, %v5012_v47, %v2168_v40 }
 0x335   : > { %v2173_v12 = vsel %vm2171_vm14, %v2172_v51, %v2170_v45 }
 0x336   : > { %v2227_v49 = vadd.f32 %v2173_v12, %v5258_v1 }
 0x338   : > { %2259 = vst [vmem:[%s4578_s4 + $0xe8] sm:$0xff] %v2227_v49 }
 0x339   : > { %2705 = shalt.err (!%p2702_p5)
}
 0x33a   : > { %s2762_s28 = smov 128   ;;  %s2763_s29 = smov 8  }
 0x33b   : > { %2381 = dma.vmem_to_hbm [thread:$0]  (%p2819_p4), %s2277_s12, 4096, %s2279_s15, %s2263_s16, %s2762_s28, %s2762_s28, %s2763_s29  }
 0x33c PF: > { %p2387_p6 = scmp.ge.s32.totalorder %s2756_s14, 2  ;;  %s2293_s30 = sand.u32 1, %s2736_s9  }
 0x33d   : > { %s2294_s3 = scalar_lea.sflag [#allocation3], %s2293_s30 }
 0x33e   : > { %p2384_p7 = pnand %p2387_p6, %p2826_p8 }
 0x340   : > { %p2385_p9 = pneg %p2384_p7 }
 0x342   : > { %2731 = dma.done.wait (%p2385_p9), %s2294_s3, 4096  }
 0x343   : > { %2733 = vsyncadd (%p2385_p9), %s2294_s3, 4294963200  ;;  %s15_s14 = sadd.s32 1, %s2756_s14   ;;  %s5259_s9 = smov %s2740_s10 }
 0x344   : > { %p12_p10 = scmp.ge.s32.totalorder %s15_s14, 4   ;;  %s5260_s10 = smov %s2744_s11 }
 0x345   : > { %s5261_s11 = smov %s2832_s22  ;;  %s5262_s12 = smov %s2752_s13 }
 0x346   : > { %s5263_s13 = smov %s5265_s17  ;;  %14 = sbr.rel (!%p12_p10) target bundleno = 4 (0x4), region = 66 }
 0x34b   :  { %2300 = vsyncpa [#allocation3], 1 }
 0x34c   :  { %2302 = vsyncpa [#allocation3 + $0x1], 1 }

</bundles_post_ra>
